<compile_context>
chip_gen: v5e
topology: v5e:2x2
jax: 0.10.0
libtpu: 0.0.40
codegen_flags: <defaults>
</compile_context>

<pallas_src>
import functools
import math

import jax
import jax.numpy as jnp
from jax.experimental import pallas as pl
from jax.experimental.pallas import tpu as pltpu


# ----------------------------------------------------------------------------
# Config (small, BERT-shaped)
# ----------------------------------------------------------------------------
CFG = dict(
    vocab_size=64,
    type_vocab_size=2,
    max_position=16,
    hidden=32,
    heads=2,
    intermediate=64,
    layers=2,
    num_labels=3,
    layer_norm_eps=1e-12,
)


# ----------------------------------------------------------------------------
# In-kernel helpers
# ----------------------------------------------------------------------------
def _mm(a, b):
    """MXU matmul: bf16 operands, f32 accumulation."""
    return jnp.dot(a.astype(jnp.bfloat16), b.astype(jnp.bfloat16),
                   preferred_element_type=jnp.float32)


def _layernorm(x, g, b, eps):
    """LayerNorm over the last dim (f32 elementwise path)."""
    mean = jnp.mean(x, axis=-1, keepdims=True)
    var = jnp.mean((x - mean) * (x - mean), axis=-1, keepdims=True)
    return (x - mean) * jax.lax.rsqrt(var + eps) * g + b


def _erf(x):
    # erf to ~1.5e-7 abs error (Abramowitz-Stegun 7.1.26); only exp + VPU ops.
    ax = jnp.abs(x)
    t = 1.0 / (1.0 + 0.3275911 * ax)
    poly = t * (0.254829592 + t * (-0.284496736 + t * (1.421413741
               + t * (-1.453152027 + t * 1.061405429))))
    y = 1.0 - poly * jnp.exp(-ax * ax)
    return jnp.where(x >= 0.0, y, -y)


def _gelu(x):
    # Exact erf-GELU (matches HF bert-base), not the tanh approximation.
    return 0.5 * x * (1.0 + _erf(x * 0.7071067811865476))


# ----------------------------------------------------------------------------
# Fused kernel: embeddings-LN -> L transformer layers -> pooler -> classifier
# (single grid step; whole batch; hidden state never leaves VMEM)
# ----------------------------------------------------------------------------
def _bert_cls_kernel(
    emb_ref, mask_ref,                      # (B*S, H) f32, (B, S) f32
    eln_g_ref, eln_b_ref,                   # (1, H) embedding LayerNorm
    qkv_w_ref, qkv_b_ref,                   # (L, H, 3H) bf16, (L, 1, 3H) f32
    o_w_ref, o_b_ref,                       # (L, H, H) bf16, (L, 1, H) f32
    ln1_g_ref, ln1_b_ref,                   # (L, 1, H)
    i_w_ref, i_b_ref,                       # (L, H, I) bf16, (L, 1, I)
    f_w_ref, f_b_ref,                       # (L, I, H) bf16, (L, 1, H)
    ln2_g_ref, ln2_b_ref,                   # (L, 1, H)
    pool_w_ref, pool_b_ref,                 # (H, H), (1, H)
    cls_w_ref, cls_b_ref,                   # (H, NL), (1, NL)
    logits_ref,                             # out: (B, NL) f32
    *, B, S, NH, D, L, eps, scale,
):
    H = NH * D
    BS = B * S

    # Embedding LayerNorm fused in; hidden state stays in VMEM/vregs for the whole pass.
    x = _layernorm(emb_ref[...], eln_g_ref[...], eln_b_ref[...], eps)     # (BS, H) f32

    # Additive attention bias built in-kernel from the (B, S) padding mask.
    neg_bias = ((1.0 - mask_ref[...]) * -10000.0)[:, None, :]             # (B, 1, S)

    for layer in range(L):                                                # static unroll
        # ---- self-attention: fused Q/K/V projection ----
        qkv = _mm(x, qkv_w_ref[layer]) + qkv_b_ref[layer]                 # (BS, 3H) f32
        qkv_bf = qkv.astype(jnp.bfloat16)                                 # single cast
        o_w = o_w_ref[layer]                                              # (H, H) bf16

        attn = jnp.zeros((BS, H), jnp.float32)
        for h in range(NH):                                               # NH tiny: unroll
            qh = qkv_bf[:, h * D:(h + 1) * D].reshape(B, S, D)
            kh = qkv_bf[:, H + h * D:H + (h + 1) * D].reshape(B, S, D)
            vh = qkv_bf[:, 2 * H + h * D:2 * H + (h + 1) * D].reshape(B, S, D)

            s = jnp.einsum('bqd,bkd->bqk', qh, kh,
                           preferred_element_type=jnp.float32) * scale    # (B, S, S)
            s = s + neg_bias                                              # mask padded keys
            s = s - jnp.max(s, axis=-1, keepdims=True)
            p = jnp.exp(s)
            denom = jnp.sum(p, axis=-1, keepdims=True)                    # (B, S, 1)
            ctx = jnp.einsum('bqk,bkd->bqd', p.astype(jnp.bfloat16), vh,
                             preferred_element_type=jnp.float32)          # (B, S, D)
            ctx = (ctx / denom).reshape(BS, D)                            # normalize small ctx
            # concat_h(ctx_h) @ W_o  ==  sum_h ctx_h @ W_o[hD:(h+1)D, :]
            # -> combine heads on the MXU; no jnp.concatenate / lane relayout.
            attn = attn + jnp.dot(ctx.astype(jnp.bfloat16),
                                  o_w[h * D:(h + 1) * D, :],
                                  preferred_element_type=jnp.float32)

        attn = attn + o_b_ref[layer]
        x = _layernorm(attn + x, ln1_g_ref[layer], ln1_b_ref[layer], eps)   # residual fused

        # ---- feed-forward ----
        inter = _gelu(_mm(x, i_w_ref[layer]) + i_b_ref[layer])
        ffn = _mm(inter, f_w_ref[layer]) + f_b_ref[layer]
        x = _layernorm(ffn + x, ln2_g_ref[layer], ln2_b_ref[layer], eps)    # residual fused

    # ---- fused pooler + 3-wide classifier: only (B, NL) logits leave VMEM ----
    cls_tok = x.reshape(B, S, H)[:, 0, :]                                 # (B, H)
    pooled = jnp.tanh(jnp.dot(cls_tok, pool_w_ref[...],
                              preferred_element_type=jnp.float32) + pool_b_ref[...])
    logits_ref[...] = (jnp.dot(pooled, cls_w_ref[...],
                               preferred_element_type=jnp.float32) + cls_b_ref[...])


# ----------------------------------------------------------------------------
# pallas_call wrapper: whole model (encoder + pooler + head) in one launch
# ----------------------------------------------------------------------------
def fused_bert_classifier(emb_flat, mask, params, cfg):
    B, S = mask.shape
    H, NH, L, NL = cfg["hidden"], cfg["heads"], cfg["layers"], cfg["num_labels"]
    D = H // NH

    kernel = functools.partial(
        _bert_cls_kernel, B=B, S=S, NH=NH, D=D, L=L,
        eps=cfg["layer_norm_eps"], scale=1.0 / math.sqrt(D))

    args = (
        emb_flat, mask,
        params["emb_ln_g"], params["emb_ln_b"],
        params["qkv_w"], params["qkv_b"], params["o_w"], params["o_b"],
        params["ln1_g"], params["ln1_b"],
        params["i_w"], params["i_b"], params["f_w"], params["f_b"],
        params["ln2_g"], params["ln2_b"],
        params["pool_w"], params["pool_b"], params["cls_w"], params["cls_b"],
    )

    return pl.pallas_call(
        kernel,
        out_shape=jax.ShapeDtypeStruct((B, NL), jnp.float32),
        in_specs=[pl.BlockSpec(memory_space=pltpu.MemorySpace.VMEM)] * len(args),
        out_specs=pl.BlockSpec(memory_space=pltpu.MemorySpace.VMEM),
        # TODO(synk): at real bert-base shapes reintroduce a batch-tiled "parallel" grid
        # axis (megacore sharding + weight-DMA amortization) and re-derive
        # vmem_limit_bytes / FFN weight buffering per chip generation; at these toy
        # shapes a single grid step is fastest (grid-step overhead dominated before).
        compiler_params=pltpu.CompilerParams(vmem_limit_bytes=32 * 1024 * 1024),
    )(*args)


# ----------------------------------------------------------------------------
# Deterministic parameter init (synthetic; shapes follow BertForSequenceClassification,
# per-layer weights stacked along a leading L axis, Q/K/V fused, big weights in bf16)
# ----------------------------------------------------------------------------
def init_params(key, cfg):
    H, I = cfg["hidden"], cfg["intermediate"]
    L, NL = cfg["layers"], cfg["num_labels"]
    k = jax.random.split(key, 10)
    bf = jnp.bfloat16

    def w(kk, shape, dtype=jnp.float32):
        return (jax.random.normal(kk, shape, jnp.float32) * 0.02).astype(dtype)

    return dict(
        word_emb=w(k[0], (cfg["vocab_size"], H)),
        pos_emb=w(k[1], (cfg["max_position"], H)),
        type_emb=w(k[2], (cfg["type_vocab_size"], H)),
        emb_ln_g=jnp.ones((1, H), jnp.float32),
        emb_ln_b=jnp.zeros((1, H), jnp.float32),
        # big per-layer weights stored bf16 (MXU consumes bf16; halves DMA + VMEM)
        qkv_w=w(k[3], (L, H, 3 * H), bf),
        qkv_b=jnp.zeros((L, 1, 3 * H), jnp.float32),
        o_w=w(k[4], (L, H, H), bf),
        o_b=jnp.zeros((L, 1, H), jnp.float32),
        ln1_g=jnp.ones((L, 1, H), jnp.float32),
        ln1_b=jnp.zeros((L, 1, H), jnp.float32),
        i_w=w(k[5], (L, H, I), bf),
        i_b=jnp.zeros((L, 1, I), jnp.float32),
        f_w=w(k[6], (L, I, H), bf),
        f_b=jnp.zeros((L, 1, H), jnp.float32),
        ln2_g=jnp.ones((L, 1, H), jnp.float32),
        ln2_b=jnp.zeros((L, 1, H), jnp.float32),
        pool_w=w(k[7], (H, H)),
        pool_b=jnp.zeros((1, H), jnp.float32),
        cls_w=w(k[8], (H, NL)),
        cls_b=jnp.zeros((1, NL), jnp.float32),
    )


# ----------------------------------------------------------------------------
# Forward pass:  (pred, loss) = SequenceClassificationModel(encoded_text, label)
# ----------------------------------------------------------------------------
def sequence_classification_forward(params, input_ids, token_type_ids, attention_mask,
                                    labels, cfg):
    B, S = input_ids.shape
    H = cfg["hidden"]

    # Embedding gathers are glue (no Pallas win); dropout omitted (eval mode).
    emb = (jnp.take(params["word_emb"], input_ids, axis=0)
           + params["pos_emb"][None, :S, :]
           + jnp.take(params["type_emb"], token_type_ids, axis=0))        # (B, S, H)
    emb_flat = emb.reshape(B * S, H)                                      # matmul M = B*S
    mask = attention_mask.astype(jnp.float32)                             # (B, S)

    logits = fused_bert_classifier(emb_flat, mask, params, cfg)           # (B, num_labels)

    # pred = argmax(logits, dim=1); loss = cross-entropy(logits, labels)
    pred = jnp.argmax(logits, axis=1)
    log_probs = jax.nn.log_softmax(logits, axis=-1)
    loss = -jnp.mean(jnp.take_along_axis(log_probs, labels[:, None], axis=1))
    return pred, loss


# ----------------------------------------------------------------------------
# Main
# ----------------------------------------------------------------------------
if __name__ == "__main__":
    key = jax.random.PRNGKey(0)
    pkey, ikey = jax.random.split(key)

    params = init_params(pkey, CFG)

    B, S = 2, 8
    input_ids = jax.random.randint(ikey, (B, S), 0, CFG["vocab_size"], dtype=jnp.int32)
    token_type_ids = jnp.zeros((B, S), jnp.int32)
    attention_mask = jnp.array([[1, 1, 1, 1, 1, 1, 1, 1],
                                [1, 1, 1, 1, 1, 1, 0, 0]], jnp.int32)
    labels = jnp.array([0, 2], jnp.int32)

    fwd = jax.jit(lambda p, ids, tt, am, lb:
                  sequence_classification_forward(p, ids, tt, am, lb, CFG))

    pred, loss = fwd(params, input_ids, token_type_ids, attention_mask, labels)
    jax.block_until_ready((pred, loss))

    assert pred.shape == (B,) and loss.shape == ()
    print("KERNEL_OK")
</pallas_src>

<mosaic_0001>
module attributes {stable_mosaic.version = 11 : i64} {
  func.func @_bert_cls_kernel(%arg0: memref<16x32xf32, #tpu.memory_space<vmem>>, %arg1: memref<2x8xf32, #tpu.memory_space<vmem>>, %arg2: memref<1x32xf32, #tpu.memory_space<vmem>>, %arg3: memref<1x32xf32, #tpu.memory_space<vmem>>, %arg4: memref<2x32x96xbf16, #tpu.memory_space<vmem>>, %arg5: memref<2x1x96xf32, #tpu.memory_space<vmem>>, %arg6: memref<2x32x32xbf16, #tpu.memory_space<vmem>>, %arg7: memref<2x1x32xf32, #tpu.memory_space<vmem>>, %arg8: memref<2x1x32xf32, #tpu.memory_space<vmem>>, %arg9: memref<2x1x32xf32, #tpu.memory_space<vmem>>, %arg10: memref<2x32x64xbf16, #tpu.memory_space<vmem>>, %arg11: memref<2x1x64xf32, #tpu.memory_space<vmem>>, %arg12: memref<2x64x32xbf16, #tpu.memory_space<vmem>>, %arg13: memref<2x1x32xf32, #tpu.memory_space<vmem>>, %arg14: memref<2x1x32xf32, #tpu.memory_space<vmem>>, %arg15: memref<2x1x32xf32, #tpu.memory_space<vmem>>, %arg16: memref<32x32xf32, #tpu.memory_space<vmem>>, %arg17: memref<1x32xf32, #tpu.memory_space<vmem>>, %arg18: memref<32x3xf32, #tpu.memory_space<vmem>>, %arg19: memref<1x3xf32, #tpu.memory_space<vmem>>, %arg20: memref<2x3xf32, #tpu.memory_space<vmem>>) attributes {dimension_semantics = [], scalar_prefetch = 0 : i64, scratch_operands = 0 : i64, tpu.core_type = #tpu.core_type<tc>} {
    %c0 = arith.constant 0 : index
    %c0_0 = arith.constant 0 : index
    %0 = vector.load %arg0[%c0, %c0_0] : memref<16x32xf32, #tpu.memory_space<vmem>>, vector<16x32xf32>
    %c0_1 = arith.constant 0 : index
    %c0_2 = arith.constant 0 : index
    %1 = vector.load %arg2[%c0_1, %c0_2] : memref<1x32xf32, #tpu.memory_space<vmem>>, vector<1x32xf32>
    %c0_3 = arith.constant 0 : index
    %c0_4 = arith.constant 0 : index
    %2 = vector.load %arg3[%c0_3, %c0_4] : memref<1x32xf32, #tpu.memory_space<vmem>>, vector<1x32xf32>
    %cst = arith.constant dense<0.000000e+00> : vector<16xf32>
    %3 = vector.multi_reduction <add>, %0, %cst [1] : vector<16x32xf32> to vector<16xf32>
    %4 = vector.shape_cast %3 : vector<16xf32> to vector<16x1xf32>
    %cst_5 = arith.constant 3.200000e+01 : f32
    %5 = vector.broadcast %cst_5 : f32 to vector<16x1xf32>
    %6 = arith.divf %4, %5 : vector<16x1xf32>
    %7 = vector.broadcast %6 : vector<16x1xf32> to vector<16x32xf32>
    %8 = arith.subf %0, %7 : vector<16x32xf32>
    %9 = vector.broadcast %6 : vector<16x1xf32> to vector<16x32xf32>
    %10 = arith.subf %0, %9 : vector<16x32xf32>
    %11 = arith.mulf %8, %10 : vector<16x32xf32>
    %cst_6 = arith.constant dense<0.000000e+00> : vector<16xf32>
    %12 = vector.multi_reduction <add>, %11, %cst_6 [1] : vector<16x32xf32> to vector<16xf32>
    %13 = vector.shape_cast %12 : vector<16xf32> to vector<16x1xf32>
    %cst_7 = arith.constant 3.200000e+01 : f32
    %14 = vector.broadcast %cst_7 : f32 to vector<16x1xf32>
    %15 = arith.divf %13, %14 : vector<16x1xf32>
    %16 = vector.broadcast %6 : vector<16x1xf32> to vector<16x32xf32>
    %17 = arith.subf %0, %16 : vector<16x32xf32>
    %cst_8 = arith.constant 9.99999996E-13 : f32
    %18 = vector.broadcast %cst_8 : f32 to vector<16x1xf32>
    %19 = arith.addf %15, %18 : vector<16x1xf32>
    %20 = math.rsqrt %19 : vector<16x1xf32>
    %21 = vector.broadcast %20 : vector<16x1xf32> to vector<16x32xf32>
    %22 = arith.mulf %17, %21 : vector<16x32xf32>
    %23 = vector.broadcast %1 : vector<1x32xf32> to vector<16x32xf32>
    %24 = arith.mulf %22, %23 : vector<16x32xf32>
    %25 = vector.broadcast %2 : vector<1x32xf32> to vector<16x32xf32>
    %26 = arith.addf %24, %25 : vector<16x32xf32>
    %c0_9 = arith.constant 0 : index
    %c0_10 = arith.constant 0 : index
    %27 = vector.load %arg1[%c0_9, %c0_10] : memref<2x8xf32, #tpu.memory_space<vmem>>, vector<2x8xf32>
    %cst_11 = arith.constant 1.000000e+00 : f32
    %28 = vector.broadcast %cst_11 : f32 to vector<2x8xf32>
    %29 = arith.subf %28, %27 : vector<2x8xf32>
    %cst_12 = arith.constant -1.000000e+04 : f32
    %30 = vector.broadcast %cst_12 : f32 to vector<2x8xf32>
    %31 = arith.mulf %29, %30 : vector<2x8xf32>
    %32 = vector.shape_cast %31 : vector<2x8xf32> to vector<2x1x8xf32>
    %c0_13 = arith.constant 0 : index
    %c0_14 = arith.constant 0 : index
    %c0_15 = arith.constant 0 : index
    %33 = vector.load %arg4[%c0_13, %c0_14, %c0_15] : memref<2x32x96xbf16, #tpu.memory_space<vmem>>, vector<1x32x96xbf16>
    %34 = vector.shape_cast %33 : vector<1x32x96xbf16> to vector<32x96xbf16>
    %35 = arith.truncf %26 : vector<16x32xf32> to vector<16x32xbf16>
    %cst_16 = arith.constant dense<0.000000e+00> : vector<16x96xf32>
    %36 = tpu.matmul %35, %34, %cst_16 {dimension_numbers = #tpu.dot_dimension_numbers<[1], [0], [0], [1], [0, 0, 1, 1], [], []>} : vector<16x32xbf16>, vector<32x96xbf16>, vector<16x96xf32> -> vector<16x96xf32>
    %c0_17 = arith.constant 0 : index
    %c0_18 = arith.constant 0 : index
    %c0_19 = arith.constant 0 : index
    %37 = vector.load %arg5[%c0_17, %c0_18, %c0_19] : memref<2x1x96xf32, #tpu.memory_space<vmem>>, vector<1x1x96xf32>
    %38 = vector.shape_cast %37 : vector<1x1x96xf32> to vector<1x96xf32>
    %39 = vector.broadcast %38 : vector<1x96xf32> to vector<16x96xf32>
    %40 = arith.addf %36, %39 : vector<16x96xf32>
    %41 = arith.truncf %40 : vector<16x96xf32> to vector<16x96xbf16>
    %c0_20 = arith.constant 0 : index
    %c0_21 = arith.constant 0 : index
    %c0_22 = arith.constant 0 : index
    %42 = vector.load %arg6[%c0_20, %c0_21, %c0_22] : memref<2x32x32xbf16, #tpu.memory_space<vmem>>, vector<1x32x32xbf16>
    %43 = vector.shape_cast %42 : vector<1x32x32xbf16> to vector<32x32xbf16>
    %cst_23 = arith.constant 0.000000e+00 : f32
    %44 = vector.broadcast %cst_23 : f32 to vector<16x32xf32>
    %45 = vector.extract_strided_slice %41 {offsets = [0, 0], sizes = [16, 16], strides = [1, 1]} : vector<16x96xbf16> to vector<16x16xbf16>
    %46 = vector.shape_cast %45 : vector<16x16xbf16> to vector<2x8x16xbf16>
    %47 = vector.extract_strided_slice %41 {offsets = [0, 32], sizes = [16, 16], strides = [1, 1]} : vector<16x96xbf16> to vector<16x16xbf16>
    %48 = vector.shape_cast %47 : vector<16x16xbf16> to vector<2x8x16xbf16>
    %49 = vector.extract_strided_slice %41 {offsets = [0, 64], sizes = [16, 16], strides = [1, 1]} : vector<16x96xbf16> to vector<16x16xbf16>
    %50 = vector.shape_cast %49 : vector<16x16xbf16> to vector<2x8x16xbf16>
    "tpu.trace_start"() <{level = 10 : i32, message = "bqd,bkd->bqk"}> : () -> ()
    %cst_24 = arith.constant dense<0.000000e+00> : vector<2x8x8xf32>
    %51 = tpu.matmul %46, %48, %cst_24 {dimension_numbers = #tpu.dot_dimension_numbers<[2], [2], [1], [1], [0, 0, 0, 1, 1, 1], [0], [0]>} : vector<2x8x16xbf16>, vector<2x8x16xbf16>, vector<2x8x8xf32> -> vector<2x8x8xf32>
    "tpu.trace_stop"() : () -> ()
    %cst_25 = arith.constant 2.500000e-01 : f32
    %52 = vector.broadcast %cst_25 : f32 to vector<2x8x8xf32>
    %53 = arith.mulf %51, %52 : vector<2x8x8xf32>
    %54 = vector.broadcast %32 : vector<2x1x8xf32> to vector<2x8x8xf32>
    %55 = arith.addf %53, %54 : vector<2x8x8xf32>
    %cst_26 = arith.constant dense<0xFF800000> : vector<2x8xf32>
    %56 = vector.multi_reduction <maximumf>, %55, %cst_26 [2] : vector<2x8x8xf32> to vector<2x8xf32>
    %57 = vector.shape_cast %56 : vector<2x8xf32> to vector<2x8x1xf32>
    %58 = vector.broadcast %57 : vector<2x8x1xf32> to vector<2x8x8xf32>
    %59 = arith.subf %55, %58 : vector<2x8x8xf32>
    %60 = math.exp %59 : vector<2x8x8xf32>
    %cst_27 = arith.constant dense<0.000000e+00> : vector<2x8xf32>
    %61 = vector.multi_reduction <add>, %60, %cst_27 [2] : vector<2x8x8xf32> to vector<2x8xf32>
    %62 = vector.shape_cast %61 : vector<2x8xf32> to vector<2x8x1xf32>
    %63 = arith.truncf %60 : vector<2x8x8xf32> to vector<2x8x8xbf16>
    "tpu.trace_start"() <{level = 10 : i32, message = "bqk,bkd->bqd"}> : () -> ()
    %cst_28 = arith.constant dense<0.000000e+00> : vector<2x8x16xf32>
    %64 = tpu.matmul %63, %50, %cst_28 {dimension_numbers = #tpu.dot_dimension_numbers<[2], [1], [1], [2], [0, 0, 0, 1, 1, 2], [0], [0]>} : vector<2x8x8xbf16>, vector<2x8x16xbf16>, vector<2x8x16xf32> -> vector<2x8x16xf32>
    "tpu.trace_stop"() : () -> ()
    %65 = vector.broadcast %62 : vector<2x8x1xf32> to vector<2x8x16xf32>
    %66 = arith.divf %64, %65 : vector<2x8x16xf32>
    %67 = vector.shape_cast %66 : vector<2x8x16xf32> to vector<16x16xf32>
    %68 = arith.truncf %67 : vector<16x16xf32> to vector<16x16xbf16>
    %69 = vector.extract_strided_slice %43 {offsets = [0, 0], sizes = [16, 32], strides = [1, 1]} : vector<32x32xbf16> to vector<16x32xbf16>
    %cst_29 = arith.constant dense<0.000000e+00> : vector<16x32xf32>
    %70 = tpu.matmul %68, %69, %cst_29 {dimension_numbers = #tpu.dot_dimension_numbers<[1], [0], [0], [1], [0, 0, 1, 1], [], []>} : vector<16x16xbf16>, vector<16x32xbf16>, vector<16x32xf32> -> vector<16x32xf32>
    %71 = arith.addf %44, %70 : vector<16x32xf32>
    %72 = vector.extract_strided_slice %41 {offsets = [0, 16], sizes = [16, 16], strides = [1, 1]} : vector<16x96xbf16> to vector<16x16xbf16>
    %73 = vector.shape_cast %72 : vector<16x16xbf16> to vector<2x8x16xbf16>
    %74 = vector.extract_strided_slice %41 {offsets = [0, 48], sizes = [16, 16], strides = [1, 1]} : vector<16x96xbf16> to vector<16x16xbf16>
    %75 = vector.shape_cast %74 : vector<16x16xbf16> to vector<2x8x16xbf16>
    %76 = vector.extract_strided_slice %41 {offsets = [0, 80], sizes = [16, 16], strides = [1, 1]} : vector<16x96xbf16> to vector<16x16xbf16>
    %77 = vector.shape_cast %76 : vector<16x16xbf16> to vector<2x8x16xbf16>
    "tpu.trace_start"() <{level = 10 : i32, message = "bqd,bkd->bqk"}> : () -> ()
    %cst_30 = arith.constant dense<0.000000e+00> : vector<2x8x8xf32>
    %78 = tpu.matmul %73, %75, %cst_30 {dimension_numbers = #tpu.dot_dimension_numbers<[2], [2], [1], [1], [0, 0, 0, 1, 1, 1], [0], [0]>} : vector<2x8x16xbf16>, vector<2x8x16xbf16>, vector<2x8x8xf32> -> vector<2x8x8xf32>
    "tpu.trace_stop"() : () -> ()
    %cst_31 = arith.constant 2.500000e-01 : f32
    %79 = vector.broadcast %cst_31 : f32 to vector<2x8x8xf32>
    %80 = arith.mulf %78, %79 : vector<2x8x8xf32>
    %81 = vector.broadcast %32 : vector<2x1x8xf32> to vector<2x8x8xf32>
    %82 = arith.addf %80, %81 : vector<2x8x8xf32>
    %cst_32 = arith.constant dense<0xFF800000> : vector<2x8xf32>
    %83 = vector.multi_reduction <maximumf>, %82, %cst_32 [2] : vector<2x8x8xf32> to vector<2x8xf32>
    %84 = vector.shape_cast %83 : vector<2x8xf32> to vector<2x8x1xf32>
    %85 = vector.broadcast %84 : vector<2x8x1xf32> to vector<2x8x8xf32>
    %86 = arith.subf %82, %85 : vector<2x8x8xf32>
    %87 = math.exp %86 : vector<2x8x8xf32>
    %cst_33 = arith.constant dense<0.000000e+00> : vector<2x8xf32>
    %88 = vector.multi_reduction <add>, %87, %cst_33 [2] : vector<2x8x8xf32> to vector<2x8xf32>
    %89 = vector.shape_cast %88 : vector<2x8xf32> to vector<2x8x1xf32>
    %90 = arith.truncf %87 : vector<2x8x8xf32> to vector<2x8x8xbf16>
    "tpu.trace_start"() <{level = 10 : i32, message = "bqk,bkd->bqd"}> : () -> ()
    %cst_34 = arith.constant dense<0.000000e+00> : vector<2x8x16xf32>
    %91 = tpu.matmul %90, %77, %cst_34 {dimension_numbers = #tpu.dot_dimension_numbers<[2], [1], [1], [2], [0, 0, 0, 1, 1, 2], [0], [0]>} : vector<2x8x8xbf16>, vector<2x8x16xbf16>, vector<2x8x16xf32> -> vector<2x8x16xf32>
    "tpu.trace_stop"() : () -> ()
    %92 = vector.broadcast %89 : vector<2x8x1xf32> to vector<2x8x16xf32>
    %93 = arith.divf %91, %92 : vector<2x8x16xf32>
    %94 = vector.shape_cast %93 : vector<2x8x16xf32> to vector<16x16xf32>
    %95 = arith.truncf %94 : vector<16x16xf32> to vector<16x16xbf16>
    %96 = vector.extract_strided_slice %43 {offsets = [16, 0], sizes = [16, 32], strides = [1, 1]} : vector<32x32xbf16> to vector<16x32xbf16>
    %cst_35 = arith.constant dense<0.000000e+00> : vector<16x32xf32>
    %97 = tpu.matmul %95, %96, %cst_35 {dimension_numbers = #tpu.dot_dimension_numbers<[1], [0], [0], [1], [0, 0, 1, 1], [], []>} : vector<16x16xbf16>, vector<16x32xbf16>, vector<16x32xf32> -> vector<16x32xf32>
    %98 = arith.addf %71, %97 : vector<16x32xf32>
    %c0_36 = arith.constant 0 : index
    %c0_37 = arith.constant 0 : index
    %c0_38 = arith.constant 0 : index
    %99 = vector.load %arg7[%c0_36, %c0_37, %c0_38] : memref<2x1x32xf32, #tpu.memory_space<vmem>>, vector<1x1x32xf32>
    %100 = vector.shape_cast %99 : vector<1x1x32xf32> to vector<1x32xf32>
    %101 = vector.broadcast %100 : vector<1x32xf32> to vector<16x32xf32>
    %102 = arith.addf %98, %101 : vector<16x32xf32>
    %103 = arith.addf %102, %26 : vector<16x32xf32>
    %c0_39 = arith.constant 0 : index
    %c0_40 = arith.constant 0 : index
    %c0_41 = arith.constant 0 : index
    %104 = vector.load %arg8[%c0_39, %c0_40, %c0_41] : memref<2x1x32xf32, #tpu.memory_space<vmem>>, vector<1x1x32xf32>
    %105 = vector.shape_cast %104 : vector<1x1x32xf32> to vector<1x32xf32>
    %c0_42 = arith.constant 0 : index
    %c0_43 = arith.constant 0 : index
    %c0_44 = arith.constant 0 : index
    %106 = vector.load %arg9[%c0_42, %c0_43, %c0_44] : memref<2x1x32xf32, #tpu.memory_space<vmem>>, vector<1x1x32xf32>
    %107 = vector.shape_cast %106 : vector<1x1x32xf32> to vector<1x32xf32>
    %cst_45 = arith.constant dense<0.000000e+00> : vector<16xf32>
    %108 = vector.multi_reduction <add>, %103, %cst_45 [1] : vector<16x32xf32> to vector<16xf32>
    %109 = vector.shape_cast %108 : vector<16xf32> to vector<16x1xf32>
    %cst_46 = arith.constant 3.200000e+01 : f32
    %110 = vector.broadcast %cst_46 : f32 to vector<16x1xf32>
    %111 = arith.divf %109, %110 : vector<16x1xf32>
    %112 = vector.broadcast %111 : vector<16x1xf32> to vector<16x32xf32>
    %113 = arith.subf %103, %112 : vector<16x32xf32>
    %114 = vector.broadcast %111 : vector<16x1xf32> to vector<16x32xf32>
    %115 = arith.subf %103, %114 : vector<16x32xf32>
    %116 = arith.mulf %113, %115 : vector<16x32xf32>
    %cst_47 = arith.constant dense<0.000000e+00> : vector<16xf32>
    %117 = vector.multi_reduction <add>, %116, %cst_47 [1] : vector<16x32xf32> to vector<16xf32>
    %118 = vector.shape_cast %117 : vector<16xf32> to vector<16x1xf32>
    %cst_48 = arith.constant 3.200000e+01 : f32
    %119 = vector.broadcast %cst_48 : f32 to vector<16x1xf32>
    %120 = arith.divf %118, %119 : vector<16x1xf32>
    %121 = vector.broadcast %111 : vector<16x1xf32> to vector<16x32xf32>
    %122 = arith.subf %103, %121 : vector<16x32xf32>
    %cst_49 = arith.constant 9.99999996E-13 : f32
    %123 = vector.broadcast %cst_49 : f32 to vector<16x1xf32>
    %124 = arith.addf %120, %123 : vector<16x1xf32>
    %125 = math.rsqrt %124 : vector<16x1xf32>
    %126 = vector.broadcast %125 : vector<16x1xf32> to vector<16x32xf32>
    %127 = arith.mulf %122, %126 : vector<16x32xf32>
    %128 = vector.broadcast %105 : vector<1x32xf32> to vector<16x32xf32>
    %129 = arith.mulf %127, %128 : vector<16x32xf32>
    %130 = vector.broadcast %107 : vector<1x32xf32> to vector<16x32xf32>
    %131 = arith.addf %129, %130 : vector<16x32xf32>
    %c0_50 = arith.constant 0 : index
    %c0_51 = arith.constant 0 : index
    %c0_52 = arith.constant 0 : index
    %132 = vector.load %arg10[%c0_50, %c0_51, %c0_52] : memref<2x32x64xbf16, #tpu.memory_space<vmem>>, vector<1x32x64xbf16>
    %133 = vector.shape_cast %132 : vector<1x32x64xbf16> to vector<32x64xbf16>
    %134 = arith.truncf %131 : vector<16x32xf32> to vector<16x32xbf16>
    %cst_53 = arith.constant dense<0.000000e+00> : vector<16x64xf32>
    %135 = tpu.matmul %134, %133, %cst_53 {dimension_numbers = #tpu.dot_dimension_numbers<[1], [0], [0], [1], [0, 0, 1, 1], [], []>} : vector<16x32xbf16>, vector<32x64xbf16>, vector<16x64xf32> -> vector<16x64xf32>
    %c0_54 = arith.constant 0 : index
    %c0_55 = arith.constant 0 : index
    %c0_56 = arith.constant 0 : index
    %136 = vector.load %arg11[%c0_54, %c0_55, %c0_56] : memref<2x1x64xf32, #tpu.memory_space<vmem>>, vector<1x1x64xf32>
    %137 = vector.shape_cast %136 : vector<1x1x64xf32> to vector<1x64xf32>
    %138 = vector.broadcast %137 : vector<1x64xf32> to vector<16x64xf32>
    %139 = arith.addf %135, %138 : vector<16x64xf32>
    %cst_57 = arith.constant 5.000000e-01 : f32
    %140 = vector.broadcast %cst_57 : f32 to vector<16x64xf32>
    %141 = arith.mulf %140, %139 : vector<16x64xf32>
    %cst_58 = arith.constant 0.707106769 : f32
    %142 = vector.broadcast %cst_58 : f32 to vector<16x64xf32>
    %143 = arith.mulf %139, %142 : vector<16x64xf32>
    %144 = math.absf %143 : vector<16x64xf32>
    %cst_59 = arith.constant 0.327591091 : f32
    %145 = vector.broadcast %cst_59 : f32 to vector<16x64xf32>
    %146 = arith.mulf %145, %144 : vector<16x64xf32>
    %cst_60 = arith.constant 1.000000e+00 : f32
    %147 = vector.broadcast %cst_60 : f32 to vector<16x64xf32>
    %148 = arith.addf %147, %146 : vector<16x64xf32>
    %cst_61 = arith.constant 1.000000e+00 : f32
    %149 = vector.broadcast %cst_61 : f32 to vector<16x64xf32>
    %150 = arith.divf %149, %148 : vector<16x64xf32>
    %cst_62 = arith.constant 1.06140542 : f32
    %151 = vector.broadcast %cst_62 : f32 to vector<16x64xf32>
    %152 = arith.mulf %150, %151 : vector<16x64xf32>
    %cst_63 = arith.constant -1.45315206 : f32
    %153 = vector.broadcast %cst_63 : f32 to vector<16x64xf32>
    %154 = arith.addf %153, %152 : vector<16x64xf32>
    %155 = arith.mulf %150, %154 : vector<16x64xf32>
    %cst_64 = arith.constant 1.42141378 : f32
    %156 = vector.broadcast %cst_64 : f32 to vector<16x64xf32>
    %157 = arith.addf %156, %155 : vector<16x64xf32>
    %158 = arith.mulf %150, %157 : vector<16x64xf32>
    %cst_65 = arith.constant -0.284496725 : f32
    %159 = vector.broadcast %cst_65 : f32 to vector<16x64xf32>
    %160 = arith.addf %159, %158 : vector<16x64xf32>
    %161 = arith.mulf %150, %160 : vector<16x64xf32>
    %cst_66 = arith.constant 0.254829586 : f32
    %162 = vector.broadcast %cst_66 : f32 to vector<16x64xf32>
    %163 = arith.addf %162, %161 : vector<16x64xf32>
    %164 = arith.mulf %150, %163 : vector<16x64xf32>
    %cst_67 = arith.constant 0.000000e+00 : f32
    %165 = vector.broadcast %cst_67 : f32 to vector<16x64xf32>
    %166 = arith.subf %165, %144 : vector<16x64xf32>
    %167 = arith.mulf %166, %144 : vector<16x64xf32>
    %168 = math.exp %167 : vector<16x64xf32>
    %169 = arith.mulf %164, %168 : vector<16x64xf32>
    %cst_68 = arith.constant 1.000000e+00 : f32
    %170 = vector.broadcast %cst_68 : f32 to vector<16x64xf32>
    %171 = arith.subf %170, %169 : vector<16x64xf32>
    %cst_69 = arith.constant 0.000000e+00 : f32
    %172 = vector.broadcast %cst_69 : f32 to vector<16x64xf32>
    %173 = arith.cmpf oge, %143, %172 : vector<16x64xf32>
    %cst_70 = arith.constant 0.000000e+00 : f32
    %174 = vector.broadcast %cst_70 : f32 to vector<16x64xf32>
    %175 = arith.subf %174, %171 : vector<16x64xf32>
    %176 = arith.select %173, %171, %175 : vector<16x64xi1>, vector<16x64xf32>
    %cst_71 = arith.constant 1.000000e+00 : f32
    %177 = vector.broadcast %cst_71 : f32 to vector<16x64xf32>
    %178 = arith.addf %177, %176 : vector<16x64xf32>
    %179 = arith.mulf %141, %178 : vector<16x64xf32>
    %c0_72 = arith.constant 0 : index
    %c0_73 = arith.constant 0 : index
    %c0_74 = arith.constant 0 : index
    %180 = vector.load %arg12[%c0_72, %c0_73, %c0_74] : memref<2x64x32xbf16, #tpu.memory_space<vmem>>, vector<1x64x32xbf16>
    %181 = vector.shape_cast %180 : vector<1x64x32xbf16> to vector<64x32xbf16>
    %182 = arith.truncf %179 : vector<16x64xf32> to vector<16x64xbf16>
    %cst_75 = arith.constant dense<0.000000e+00> : vector<16x32xf32>
    %183 = tpu.matmul %182, %181, %cst_75 {dimension_numbers = #tpu.dot_dimension_numbers<[1], [0], [0], [1], [0, 0, 1, 1], [], []>} : vector<16x64xbf16>, vector<64x32xbf16>, vector<16x32xf32> -> vector<16x32xf32>
    %c0_76 = arith.constant 0 : index
    %c0_77 = arith.constant 0 : index
    %c0_78 = arith.constant 0 : index
    %184 = vector.load %arg13[%c0_76, %c0_77, %c0_78] : memref<2x1x32xf32, #tpu.memory_space<vmem>>, vector<1x1x32xf32>
    %185 = vector.shape_cast %184 : vector<1x1x32xf32> to vector<1x32xf32>
    %186 = vector.broadcast %185 : vector<1x32xf32> to vector<16x32xf32>
    %187 = arith.addf %183, %186 : vector<16x32xf32>
    %188 = arith.addf %187, %131 : vector<16x32xf32>
    %c0_79 = arith.constant 0 : index
    %c0_80 = arith.constant 0 : index
    %c0_81 = arith.constant 0 : index
    %189 = vector.load %arg14[%c0_79, %c0_80, %c0_81] : memref<2x1x32xf32, #tpu.memory_space<vmem>>, vector<1x1x32xf32>
    %190 = vector.shape_cast %189 : vector<1x1x32xf32> to vector<1x32xf32>
    %c0_82 = arith.constant 0 : index
    %c0_83 = arith.constant 0 : index
    %c0_84 = arith.constant 0 : index
    %191 = vector.load %arg15[%c0_82, %c0_83, %c0_84] : memref<2x1x32xf32, #tpu.memory_space<vmem>>, vector<1x1x32xf32>
    %192 = vector.shape_cast %191 : vector<1x1x32xf32> to vector<1x32xf32>
    %cst_85 = arith.constant dense<0.000000e+00> : vector<16xf32>
    %193 = vector.multi_reduction <add>, %188, %cst_85 [1] : vector<16x32xf32> to vector<16xf32>
    %194 = vector.shape_cast %193 : vector<16xf32> to vector<16x1xf32>
    %cst_86 = arith.constant 3.200000e+01 : f32
    %195 = vector.broadcast %cst_86 : f32 to vector<16x1xf32>
    %196 = arith.divf %194, %195 : vector<16x1xf32>
    %197 = vector.broadcast %196 : vector<16x1xf32> to vector<16x32xf32>
    %198 = arith.subf %188, %197 : vector<16x32xf32>
    %199 = vector.broadcast %196 : vector<16x1xf32> to vector<16x32xf32>
    %200 = arith.subf %188, %199 : vector<16x32xf32>
    %201 = arith.mulf %198, %200 : vector<16x32xf32>
    %cst_87 = arith.constant dense<0.000000e+00> : vector<16xf32>
    %202 = vector.multi_reduction <add>, %201, %cst_87 [1] : vector<16x32xf32> to vector<16xf32>
    %203 = vector.shape_cast %202 : vector<16xf32> to vector<16x1xf32>
    %cst_88 = arith.constant 3.200000e+01 : f32
    %204 = vector.broadcast %cst_88 : f32 to vector<16x1xf32>
    %205 = arith.divf %203, %204 : vector<16x1xf32>
    %206 = vector.broadcast %196 : vector<16x1xf32> to vector<16x32xf32>
    %207 = arith.subf %188, %206 : vector<16x32xf32>
    %cst_89 = arith.constant 9.99999996E-13 : f32
    %208 = vector.broadcast %cst_89 : f32 to vector<16x1xf32>
    %209 = arith.addf %205, %208 : vector<16x1xf32>
    %210 = math.rsqrt %209 : vector<16x1xf32>
    %211 = vector.broadcast %210 : vector<16x1xf32> to vector<16x32xf32>
    %212 = arith.mulf %207, %211 : vector<16x32xf32>
    %213 = vector.broadcast %190 : vector<1x32xf32> to vector<16x32xf32>
    %214 = arith.mulf %212, %213 : vector<16x32xf32>
    %215 = vector.broadcast %192 : vector<1x32xf32> to vector<16x32xf32>
    %216 = arith.addf %214, %215 : vector<16x32xf32>
    %c1 = arith.constant 1 : index
    %c0_90 = arith.constant 0 : index
    %c0_91 = arith.constant 0 : index
    %217 = vector.load %arg4[%c1, %c0_90, %c0_91] : memref<2x32x96xbf16, #tpu.memory_space<vmem>>, vector<1x32x96xbf16>
    %218 = vector.shape_cast %217 : vector<1x32x96xbf16> to vector<32x96xbf16>
    %219 = arith.truncf %216 : vector<16x32xf32> to vector<16x32xbf16>
    %cst_92 = arith.constant dense<0.000000e+00> : vector<16x96xf32>
    %220 = tpu.matmul %219, %218, %cst_92 {dimension_numbers = #tpu.dot_dimension_numbers<[1], [0], [0], [1], [0, 0, 1, 1], [], []>} : vector<16x32xbf16>, vector<32x96xbf16>, vector<16x96xf32> -> vector<16x96xf32>
    %c1_93 = arith.constant 1 : index
    %c0_94 = arith.constant 0 : index
    %c0_95 = arith.constant 0 : index
    %221 = vector.load %arg5[%c1_93, %c0_94, %c0_95] : memref<2x1x96xf32, #tpu.memory_space<vmem>>, vector<1x1x96xf32>
    %222 = vector.shape_cast %221 : vector<1x1x96xf32> to vector<1x96xf32>
    %223 = vector.broadcast %222 : vector<1x96xf32> to vector<16x96xf32>
    %224 = arith.addf %220, %223 : vector<16x96xf32>
    %225 = arith.truncf %224 : vector<16x96xf32> to vector<16x96xbf16>
    %c1_96 = arith.constant 1 : index
    %c0_97 = arith.constant 0 : index
    %c0_98 = arith.constant 0 : index
    %226 = vector.load %arg6[%c1_96, %c0_97, %c0_98] : memref<2x32x32xbf16, #tpu.memory_space<vmem>>, vector<1x32x32xbf16>
    %227 = vector.shape_cast %226 : vector<1x32x32xbf16> to vector<32x32xbf16>
    %cst_99 = arith.constant 0.000000e+00 : f32
    %228 = vector.broadcast %cst_99 : f32 to vector<16x32xf32>
    %229 = vector.extract_strided_slice %225 {offsets = [0, 0], sizes = [16, 16], strides = [1, 1]} : vector<16x96xbf16> to vector<16x16xbf16>
    %230 = vector.shape_cast %229 : vector<16x16xbf16> to vector<2x8x16xbf16>
    %231 = vector.extract_strided_slice %225 {offsets = [0, 32], sizes = [16, 16], strides = [1, 1]} : vector<16x96xbf16> to vector<16x16xbf16>
    %232 = vector.shape_cast %231 : vector<16x16xbf16> to vector<2x8x16xbf16>
    %233 = vector.extract_strided_slice %225 {offsets = [0, 64], sizes = [16, 16], strides = [1, 1]} : vector<16x96xbf16> to vector<16x16xbf16>
    %234 = vector.shape_cast %233 : vector<16x16xbf16> to vector<2x8x16xbf16>
    "tpu.trace_start"() <{level = 10 : i32, message = "bqd,bkd->bqk"}> : () -> ()
    %cst_100 = arith.constant dense<0.000000e+00> : vector<2x8x8xf32>
    %235 = tpu.matmul %230, %232, %cst_100 {dimension_numbers = #tpu.dot_dimension_numbers<[2], [2], [1], [1], [0, 0, 0, 1, 1, 1], [0], [0]>} : vector<2x8x16xbf16>, vector<2x8x16xbf16>, vector<2x8x8xf32> -> vector<2x8x8xf32>
    "tpu.trace_stop"() : () -> ()
    %cst_101 = arith.constant 2.500000e-01 : f32
    %236 = vector.broadcast %cst_101 : f32 to vector<2x8x8xf32>
    %237 = arith.mulf %235, %236 : vector<2x8x8xf32>
    %238 = vector.broadcast %32 : vector<2x1x8xf32> to vector<2x8x8xf32>
    %239 = arith.addf %237, %238 : vector<2x8x8xf32>
    %cst_102 = arith.constant dense<0xFF800000> : vector<2x8xf32>
    %240 = vector.multi_reduction <maximumf>, %239, %cst_102 [2] : vector<2x8x8xf32> to vector<2x8xf32>
    %241 = vector.shape_cast %240 : vector<2x8xf32> to vector<2x8x1xf32>
    %242 = vector.broadcast %241 : vector<2x8x1xf32> to vector<2x8x8xf32>
    %243 = arith.subf %239, %242 : vector<2x8x8xf32>
    %244 = math.exp %243 : vector<2x8x8xf32>
    %cst_103 = arith.constant dense<0.000000e+00> : vector<2x8xf32>
    %245 = vector.multi_reduction <add>, %244, %cst_103 [2] : vector<2x8x8xf32> to vector<2x8xf32>
    %246 = vector.shape_cast %245 : vector<2x8xf32> to vector<2x8x1xf32>
    %247 = arith.truncf %244 : vector<2x8x8xf32> to vector<2x8x8xbf16>
    "tpu.trace_start"() <{level = 10 : i32, message = "bqk,bkd->bqd"}> : () -> ()
    %cst_104 = arith.constant dense<0.000000e+00> : vector<2x8x16xf32>
    %248 = tpu.matmul %247, %234, %cst_104 {dimension_numbers = #tpu.dot_dimension_numbers<[2], [1], [1], [2], [0, 0, 0, 1, 1, 2], [0], [0]>} : vector<2x8x8xbf16>, vector<2x8x16xbf16>, vector<2x8x16xf32> -> vector<2x8x16xf32>
    "tpu.trace_stop"() : () -> ()
    %249 = vector.broadcast %246 : vector<2x8x1xf32> to vector<2x8x16xf32>
    %250 = arith.divf %248, %249 : vector<2x8x16xf32>
    %251 = vector.shape_cast %250 : vector<2x8x16xf32> to vector<16x16xf32>
    %252 = arith.truncf %251 : vector<16x16xf32> to vector<16x16xbf16>
    %253 = vector.extract_strided_slice %227 {offsets = [0, 0], sizes = [16, 32], strides = [1, 1]} : vector<32x32xbf16> to vector<16x32xbf16>
    %cst_105 = arith.constant dense<0.000000e+00> : vector<16x32xf32>
    %254 = tpu.matmul %252, %253, %cst_105 {dimension_numbers = #tpu.dot_dimension_numbers<[1], [0], [0], [1], [0, 0, 1, 1], [], []>} : vector<16x16xbf16>, vector<16x32xbf16>, vector<16x32xf32> -> vector<16x32xf32>
    %255 = arith.addf %228, %254 : vector<16x32xf32>
    %256 = vector.extract_strided_slice %225 {offsets = [0, 16], sizes = [16, 16], strides = [1, 1]} : vector<16x96xbf16> to vector<16x16xbf16>
    %257 = vector.shape_cast %256 : vector<16x16xbf16> to vector<2x8x16xbf16>
    %258 = vector.extract_strided_slice %225 {offsets = [0, 48], sizes = [16, 16], strides = [1, 1]} : vector<16x96xbf16> to vector<16x16xbf16>
    %259 = vector.shape_cast %258 : vector<16x16xbf16> to vector<2x8x16xbf16>
    %260 = vector.extract_strided_slice %225 {offsets = [0, 80], sizes = [16, 16], strides = [1, 1]} : vector<16x96xbf16> to vector<16x16xbf16>
    %261 = vector.shape_cast %260 : vector<16x16xbf16> to vector<2x8x16xbf16>
    "tpu.trace_start"() <{level = 10 : i32, message = "bqd,bkd->bqk"}> : () -> ()
    %cst_106 = arith.constant dense<0.000000e+00> : vector<2x8x8xf32>
    %262 = tpu.matmul %257, %259, %cst_106 {dimension_numbers = #tpu.dot_dimension_numbers<[2], [2], [1], [1], [0, 0, 0, 1, 1, 1], [0], [0]>} : vector<2x8x16xbf16>, vector<2x8x16xbf16>, vector<2x8x8xf32> -> vector<2x8x8xf32>
    "tpu.trace_stop"() : () -> ()
    %cst_107 = arith.constant 2.500000e-01 : f32
    %263 = vector.broadcast %cst_107 : f32 to vector<2x8x8xf32>
    %264 = arith.mulf %262, %263 : vector<2x8x8xf32>
    %265 = vector.broadcast %32 : vector<2x1x8xf32> to vector<2x8x8xf32>
    %266 = arith.addf %264, %265 : vector<2x8x8xf32>
    %cst_108 = arith.constant dense<0xFF800000> : vector<2x8xf32>
    %267 = vector.multi_reduction <maximumf>, %266, %cst_108 [2] : vector<2x8x8xf32> to vector<2x8xf32>
    %268 = vector.shape_cast %267 : vector<2x8xf32> to vector<2x8x1xf32>
    %269 = vector.broadcast %268 : vector<2x8x1xf32> to vector<2x8x8xf32>
    %270 = arith.subf %266, %269 : vector<2x8x8xf32>
    %271 = math.exp %270 : vector<2x8x8xf32>
    %cst_109 = arith.constant dense<0.000000e+00> : vector<2x8xf32>
    %272 = vector.multi_reduction <add>, %271, %cst_109 [2] : vector<2x8x8xf32> to vector<2x8xf32>
    %273 = vector.shape_cast %272 : vector<2x8xf32> to vector<2x8x1xf32>
    %274 = arith.truncf %271 : vector<2x8x8xf32> to vector<2x8x8xbf16>
    "tpu.trace_start"() <{level = 10 : i32, message = "bqk,bkd->bqd"}> : () -> ()
    %cst_110 = arith.constant dense<0.000000e+00> : vector<2x8x16xf32>
    %275 = tpu.matmul %274, %261, %cst_110 {dimension_numbers = #tpu.dot_dimension_numbers<[2], [1], [1], [2], [0, 0, 0, 1, 1, 2], [0], [0]>} : vector<2x8x8xbf16>, vector<2x8x16xbf16>, vector<2x8x16xf32> -> vector<2x8x16xf32>
    "tpu.trace_stop"() : () -> ()
    %276 = vector.broadcast %273 : vector<2x8x1xf32> to vector<2x8x16xf32>
    %277 = arith.divf %275, %276 : vector<2x8x16xf32>
    %278 = vector.shape_cast %277 : vector<2x8x16xf32> to vector<16x16xf32>
    %279 = arith.truncf %278 : vector<16x16xf32> to vector<16x16xbf16>
    %280 = vector.extract_strided_slice %227 {offsets = [16, 0], sizes = [16, 32], strides = [1, 1]} : vector<32x32xbf16> to vector<16x32xbf16>
    %cst_111 = arith.constant dense<0.000000e+00> : vector<16x32xf32>
    %281 = tpu.matmul %279, %280, %cst_111 {dimension_numbers = #tpu.dot_dimension_numbers<[1], [0], [0], [1], [0, 0, 1, 1], [], []>} : vector<16x16xbf16>, vector<16x32xbf16>, vector<16x32xf32> -> vector<16x32xf32>
    %282 = arith.addf %255, %281 : vector<16x32xf32>
    %c1_112 = arith.constant 1 : index
    %c0_113 = arith.constant 0 : index
    %c0_114 = arith.constant 0 : index
    %283 = vector.load %arg7[%c1_112, %c0_113, %c0_114] : memref<2x1x32xf32, #tpu.memory_space<vmem>>, vector<1x1x32xf32>
    %284 = vector.shape_cast %283 : vector<1x1x32xf32> to vector<1x32xf32>
    %285 = vector.broadcast %284 : vector<1x32xf32> to vector<16x32xf32>
    %286 = arith.addf %282, %285 : vector<16x32xf32>
    %287 = arith.addf %286, %216 : vector<16x32xf32>
    %c1_115 = arith.constant 1 : index
    %c0_116 = arith.constant 0 : index
    %c0_117 = arith.constant 0 : index
    %288 = vector.load %arg8[%c1_115, %c0_116, %c0_117] : memref<2x1x32xf32, #tpu.memory_space<vmem>>, vector<1x1x32xf32>
    %289 = vector.shape_cast %288 : vector<1x1x32xf32> to vector<1x32xf32>
    %c1_118 = arith.constant 1 : index
    %c0_119 = arith.constant 0 : index
    %c0_120 = arith.constant 0 : index
    %290 = vector.load %arg9[%c1_118, %c0_119, %c0_120] : memref<2x1x32xf32, #tpu.memory_space<vmem>>, vector<1x1x32xf32>
    %291 = vector.shape_cast %290 : vector<1x1x32xf32> to vector<1x32xf32>
    %cst_121 = arith.constant dense<0.000000e+00> : vector<16xf32>
    %292 = vector.multi_reduction <add>, %287, %cst_121 [1] : vector<16x32xf32> to vector<16xf32>
    %293 = vector.shape_cast %292 : vector<16xf32> to vector<16x1xf32>
    %cst_122 = arith.constant 3.200000e+01 : f32
    %294 = vector.broadcast %cst_122 : f32 to vector<16x1xf32>
    %295 = arith.divf %293, %294 : vector<16x1xf32>
    %296 = vector.broadcast %295 : vector<16x1xf32> to vector<16x32xf32>
    %297 = arith.subf %287, %296 : vector<16x32xf32>
    %298 = vector.broadcast %295 : vector<16x1xf32> to vector<16x32xf32>
    %299 = arith.subf %287, %298 : vector<16x32xf32>
    %300 = arith.mulf %297, %299 : vector<16x32xf32>
    %cst_123 = arith.constant dense<0.000000e+00> : vector<16xf32>
    %301 = vector.multi_reduction <add>, %300, %cst_123 [1] : vector<16x32xf32> to vector<16xf32>
    %302 = vector.shape_cast %301 : vector<16xf32> to vector<16x1xf32>
    %cst_124 = arith.constant 3.200000e+01 : f32
    %303 = vector.broadcast %cst_124 : f32 to vector<16x1xf32>
    %304 = arith.divf %302, %303 : vector<16x1xf32>
    %305 = vector.broadcast %295 : vector<16x1xf32> to vector<16x32xf32>
    %306 = arith.subf %287, %305 : vector<16x32xf32>
    %cst_125 = arith.constant 9.99999996E-13 : f32
    %307 = vector.broadcast %cst_125 : f32 to vector<16x1xf32>
    %308 = arith.addf %304, %307 : vector<16x1xf32>
    %309 = math.rsqrt %308 : vector<16x1xf32>
    %310 = vector.broadcast %309 : vector<16x1xf32> to vector<16x32xf32>
    %311 = arith.mulf %306, %310 : vector<16x32xf32>
    %312 = vector.broadcast %289 : vector<1x32xf32> to vector<16x32xf32>
    %313 = arith.mulf %311, %312 : vector<16x32xf32>
    %314 = vector.broadcast %291 : vector<1x32xf32> to vector<16x32xf32>
    %315 = arith.addf %313, %314 : vector<16x32xf32>
    %c1_126 = arith.constant 1 : index
    %c0_127 = arith.constant 0 : index
    %c0_128 = arith.constant 0 : index
    %316 = vector.load %arg10[%c1_126, %c0_127, %c0_128] : memref<2x32x64xbf16, #tpu.memory_space<vmem>>, vector<1x32x64xbf16>
    %317 = vector.shape_cast %316 : vector<1x32x64xbf16> to vector<32x64xbf16>
    %318 = arith.truncf %315 : vector<16x32xf32> to vector<16x32xbf16>
    %cst_129 = arith.constant dense<0.000000e+00> : vector<16x64xf32>
    %319 = tpu.matmul %318, %317, %cst_129 {dimension_numbers = #tpu.dot_dimension_numbers<[1], [0], [0], [1], [0, 0, 1, 1], [], []>} : vector<16x32xbf16>, vector<32x64xbf16>, vector<16x64xf32> -> vector<16x64xf32>
    %c1_130 = arith.constant 1 : index
    %c0_131 = arith.constant 0 : index
    %c0_132 = arith.constant 0 : index
    %320 = vector.load %arg11[%c1_130, %c0_131, %c0_132] : memref<2x1x64xf32, #tpu.memory_space<vmem>>, vector<1x1x64xf32>
    %321 = vector.shape_cast %320 : vector<1x1x64xf32> to vector<1x64xf32>
    %322 = vector.broadcast %321 : vector<1x64xf32> to vector<16x64xf32>
    %323 = arith.addf %319, %322 : vector<16x64xf32>
    %cst_133 = arith.constant 5.000000e-01 : f32
    %324 = vector.broadcast %cst_133 : f32 to vector<16x64xf32>
    %325 = arith.mulf %324, %323 : vector<16x64xf32>
    %cst_134 = arith.constant 0.707106769 : f32
    %326 = vector.broadcast %cst_134 : f32 to vector<16x64xf32>
    %327 = arith.mulf %323, %326 : vector<16x64xf32>
    %328 = math.absf %327 : vector<16x64xf32>
    %cst_135 = arith.constant 0.327591091 : f32
    %329 = vector.broadcast %cst_135 : f32 to vector<16x64xf32>
    %330 = arith.mulf %329, %328 : vector<16x64xf32>
    %cst_136 = arith.constant 1.000000e+00 : f32
    %331 = vector.broadcast %cst_136 : f32 to vector<16x64xf32>
    %332 = arith.addf %331, %330 : vector<16x64xf32>
    %cst_137 = arith.constant 1.000000e+00 : f32
    %333 = vector.broadcast %cst_137 : f32 to vector<16x64xf32>
    %334 = arith.divf %333, %332 : vector<16x64xf32>
    %cst_138 = arith.constant 1.06140542 : f32
    %335 = vector.broadcast %cst_138 : f32 to vector<16x64xf32>
    %336 = arith.mulf %334, %335 : vector<16x64xf32>
    %cst_139 = arith.constant -1.45315206 : f32
    %337 = vector.broadcast %cst_139 : f32 to vector<16x64xf32>
    %338 = arith.addf %337, %336 : vector<16x64xf32>
    %339 = arith.mulf %334, %338 : vector<16x64xf32>
    %cst_140 = arith.constant 1.42141378 : f32
    %340 = vector.broadcast %cst_140 : f32 to vector<16x64xf32>
    %341 = arith.addf %340, %339 : vector<16x64xf32>
    %342 = arith.mulf %334, %341 : vector<16x64xf32>
    %cst_141 = arith.constant -0.284496725 : f32
    %343 = vector.broadcast %cst_141 : f32 to vector<16x64xf32>
    %344 = arith.addf %343, %342 : vector<16x64xf32>
    %345 = arith.mulf %334, %344 : vector<16x64xf32>
    %cst_142 = arith.constant 0.254829586 : f32
    %346 = vector.broadcast %cst_142 : f32 to vector<16x64xf32>
    %347 = arith.addf %346, %345 : vector<16x64xf32>
    %348 = arith.mulf %334, %347 : vector<16x64xf32>
    %cst_143 = arith.constant 0.000000e+00 : f32
    %349 = vector.broadcast %cst_143 : f32 to vector<16x64xf32>
    %350 = arith.subf %349, %328 : vector<16x64xf32>
    %351 = arith.mulf %350, %328 : vector<16x64xf32>
    %352 = math.exp %351 : vector<16x64xf32>
    %353 = arith.mulf %348, %352 : vector<16x64xf32>
    %cst_144 = arith.constant 1.000000e+00 : f32
    %354 = vector.broadcast %cst_144 : f32 to vector<16x64xf32>
    %355 = arith.subf %354, %353 : vector<16x64xf32>
    %cst_145 = arith.constant 0.000000e+00 : f32
    %356 = vector.broadcast %cst_145 : f32 to vector<16x64xf32>
    %357 = arith.cmpf oge, %327, %356 : vector<16x64xf32>
    %cst_146 = arith.constant 0.000000e+00 : f32
    %358 = vector.broadcast %cst_146 : f32 to vector<16x64xf32>
    %359 = arith.subf %358, %355 : vector<16x64xf32>
    %360 = arith.select %357, %355, %359 : vector<16x64xi1>, vector<16x64xf32>
    %cst_147 = arith.constant 1.000000e+00 : f32
    %361 = vector.broadcast %cst_147 : f32 to vector<16x64xf32>
    %362 = arith.addf %361, %360 : vector<16x64xf32>
    %363 = arith.mulf %325, %362 : vector<16x64xf32>
    %c1_148 = arith.constant 1 : index
    %c0_149 = arith.constant 0 : index
    %c0_150 = arith.constant 0 : index
    %364 = vector.load %arg12[%c1_148, %c0_149, %c0_150] : memref<2x64x32xbf16, #tpu.memory_space<vmem>>, vector<1x64x32xbf16>
    %365 = vector.shape_cast %364 : vector<1x64x32xbf16> to vector<64x32xbf16>
    %366 = arith.truncf %363 : vector<16x64xf32> to vector<16x64xbf16>
    %cst_151 = arith.constant dense<0.000000e+00> : vector<16x32xf32>
    %367 = tpu.matmul %366, %365, %cst_151 {dimension_numbers = #tpu.dot_dimension_numbers<[1], [0], [0], [1], [0, 0, 1, 1], [], []>} : vector<16x64xbf16>, vector<64x32xbf16>, vector<16x32xf32> -> vector<16x32xf32>
    %c1_152 = arith.constant 1 : index
    %c0_153 = arith.constant 0 : index
    %c0_154 = arith.constant 0 : index
    %368 = vector.load %arg13[%c1_152, %c0_153, %c0_154] : memref<2x1x32xf32, #tpu.memory_space<vmem>>, vector<1x1x32xf32>
    %369 = vector.shape_cast %368 : vector<1x1x32xf32> to vector<1x32xf32>
    %370 = vector.broadcast %369 : vector<1x32xf32> to vector<16x32xf32>
    %371 = arith.addf %367, %370 : vector<16x32xf32>
    %372 = arith.addf %371, %315 : vector<16x32xf32>
    %c1_155 = arith.constant 1 : index
    %c0_156 = arith.constant 0 : index
    %c0_157 = arith.constant 0 : index
    %373 = vector.load %arg14[%c1_155, %c0_156, %c0_157] : memref<2x1x32xf32, #tpu.memory_space<vmem>>, vector<1x1x32xf32>
    %374 = vector.shape_cast %373 : vector<1x1x32xf32> to vector<1x32xf32>
    %c1_158 = arith.constant 1 : index
    %c0_159 = arith.constant 0 : index
    %c0_160 = arith.constant 0 : index
    %375 = vector.load %arg15[%c1_158, %c0_159, %c0_160] : memref<2x1x32xf32, #tpu.memory_space<vmem>>, vector<1x1x32xf32>
    %376 = vector.shape_cast %375 : vector<1x1x32xf32> to vector<1x32xf32>
    %cst_161 = arith.constant dense<0.000000e+00> : vector<16xf32>
    %377 = vector.multi_reduction <add>, %372, %cst_161 [1] : vector<16x32xf32> to vector<16xf32>
    %378 = vector.shape_cast %377 : vector<16xf32> to vector<16x1xf32>
    %cst_162 = arith.constant 3.200000e+01 : f32
    %379 = vector.broadcast %cst_162 : f32 to vector<16x1xf32>
    %380 = arith.divf %378, %379 : vector<16x1xf32>
    %381 = vector.broadcast %380 : vector<16x1xf32> to vector<16x32xf32>
    %382 = arith.subf %372, %381 : vector<16x32xf32>
    %383 = vector.broadcast %380 : vector<16x1xf32> to vector<16x32xf32>
    %384 = arith.subf %372, %383 : vector<16x32xf32>
    %385 = arith.mulf %382, %384 : vector<16x32xf32>
    %cst_163 = arith.constant dense<0.000000e+00> : vector<16xf32>
    %386 = vector.multi_reduction <add>, %385, %cst_163 [1] : vector<16x32xf32> to vector<16xf32>
    %387 = vector.shape_cast %386 : vector<16xf32> to vector<16x1xf32>
    %cst_164 = arith.constant 3.200000e+01 : f32
    %388 = vector.broadcast %cst_164 : f32 to vector<16x1xf32>
    %389 = arith.divf %387, %388 : vector<16x1xf32>
    %390 = vector.broadcast %380 : vector<16x1xf32> to vector<16x32xf32>
    %391 = arith.subf %372, %390 : vector<16x32xf32>
    %cst_165 = arith.constant 9.99999996E-13 : f32
    %392 = vector.broadcast %cst_165 : f32 to vector<16x1xf32>
    %393 = arith.addf %389, %392 : vector<16x1xf32>
    %394 = math.rsqrt %393 : vector<16x1xf32>
    %395 = vector.broadcast %394 : vector<16x1xf32> to vector<16x32xf32>
    %396 = arith.mulf %391, %395 : vector<16x32xf32>
    %397 = vector.broadcast %374 : vector<1x32xf32> to vector<16x32xf32>
    %398 = arith.mulf %396, %397 : vector<16x32xf32>
    %399 = vector.broadcast %376 : vector<1x32xf32> to vector<16x32xf32>
    %400 = arith.addf %398, %399 : vector<16x32xf32>
    %401 = vector.shape_cast %400 : vector<16x32xf32> to vector<2x8x32xf32>
    %402 = vector.extract_strided_slice %401 {offsets = [0, 0, 0], sizes = [2, 1, 32], strides = [1, 1, 1]} : vector<2x8x32xf32> to vector<2x1x32xf32>
    %403 = vector.shape_cast %402 : vector<2x1x32xf32> to vector<2x32xf32>
    %c0_166 = arith.constant 0 : index
    %c0_167 = arith.constant 0 : index
    %404 = vector.load %arg16[%c0_166, %c0_167] : memref<32x32xf32, #tpu.memory_space<vmem>>, vector<32x32xf32>
    %cst_168 = arith.constant dense<0.000000e+00> : vector<2x32xf32>
    %405 = tpu.matmul %403, %404, %cst_168 {dimension_numbers = #tpu.dot_dimension_numbers<[1], [0], [0], [1], [0, 0, 1, 1], [], []>} : vector<2x32xf32>, vector<32x32xf32>, vector<2x32xf32> -> vector<2x32xf32>
    %c0_169 = arith.constant 0 : index
    %c0_170 = arith.constant 0 : index
    %406 = vector.load %arg17[%c0_169, %c0_170] : memref<1x32xf32, #tpu.memory_space<vmem>>, vector<1x32xf32>
    %407 = vector.broadcast %406 : vector<1x32xf32> to vector<2x32xf32>
    %408 = arith.addf %405, %407 : vector<2x32xf32>
    %409 = math.tanh %408 : vector<2x32xf32>
    %c0_171 = arith.constant 0 : index
    %c0_172 = arith.constant 0 : index
    %410 = vector.load %arg18[%c0_171, %c0_172] : memref<32x3xf32, #tpu.memory_space<vmem>>, vector<32x3xf32>
    %cst_173 = arith.constant dense<0.000000e+00> : vector<2x3xf32>
    %411 = tpu.matmul %409, %410, %cst_173 {dimension_numbers = #tpu.dot_dimension_numbers<[1], [0], [0], [1], [0, 0, 1, 1], [], []>} : vector<2x32xf32>, vector<32x3xf32>, vector<2x3xf32> -> vector<2x3xf32>
    %c0_174 = arith.constant 0 : index
    %c0_175 = arith.constant 0 : index
    %412 = vector.load %arg19[%c0_174, %c0_175] : memref<1x3xf32, #tpu.memory_space<vmem>>, vector<1x3xf32>
    %413 = vector.broadcast %412 : vector<1x3xf32> to vector<2x3xf32>
    %414 = arith.addf %411, %413 : vector<2x3xf32>
    %c0_176 = arith.constant 0 : index
    %c0_177 = arith.constant 0 : index
    %415 = vector.load %arg20[%c0_176, %c0_177] : memref<2x3xf32, #tpu.memory_space<vmem>>, vector<2x3xf32>
    tpu.vector_store %arg20[%c0_176, %c0_177], %414 {strides = array<i32>} : memref<2x3xf32, #tpu.memory_space<vmem>>, vector<2x3xf32>,
    return
  }
}

</mosaic_0001>

<bundles_post_ra>
// kernel: _lambda_.1
= control target key start
LH: loop header
LB: loop body
LE: loop exit
PB: predicated region body
PF: predicated region fallthrough
CT: control target
= control target key end

     0   :  { %vm70_vm0 = vcmask 261120   ;;  %v1828_v4 = vmov 32.0   ;;  %s1830_s25 = smov 96   ;;  %s1832_s27 = smov 112   ;;  %vm186_vm8 = vcmask 130048   ;;  %vm264_vm9 = vcmask 1043456   ;;  %s2310_s0 = inlined_call_operand.vmem [shape: f32[16,32], index: 0, kind: input, shape index: {}]   ;;  %s2311_s2 = inlined_call_operand.vmem [shape: f32[1,32], index: 2, kind: input, shape index: {}]   ;;  %s2312_s3 = inlined_call_operand.vmem [shape: f32[1,32], index: 3, kind: input, shape index: {}]   ;;  %s2313_s5 = inlined_call_operand.vmem [shape: f32[2,1,96], index: 5, kind: input, shape index: {}]   ;;  %s2314_s4 = inlined_call_operand.vmem [shape: bf16[2,32,96], index: 4, kind: input, shape index: {}]   ;;  %s2315_s1 = inlined_call_operand.vmem [shape: f32[2,8], index: 1, kind: input, shape index: {}]   ;;  %s2316_s6 = inlined_call_operand.vmem [shape: bf16[2,32,32], index: 6, kind: input, shape index: {}]   ;;  %s2317_s7 = inlined_call_operand.vmem [shape: f32[2,1,32], index: 7, kind: input, shape index: {}]   ;;  %s2318_s8 = inlined_call_operand.vmem [shape: f32[2,1,32], index: 8, kind: input, shape index: {}]   ;;  %s2319_s9 = inlined_call_operand.vmem [shape: f32[2,1,32], index: 9, kind: input, shape index: {}]   ;;  %s2320_s11 = inlined_call_operand.vmem [shape: f32[2,1,64], index: 11, kind: input, shape index: {}]   ;;  %s2321_s10 = inlined_call_operand.vmem [shape: bf16[2,32,64], index: 10, kind: input, shape index: {}]   ;;  %s2322_s13 = inlined_call_operand.vmem [shape: f32[2,1,32], index: 13, kind: input, shape index: {}]   ;;  %s2323_s12 = inlined_call_operand.vmem [shape: bf16[2,64,32], index: 12, kind: input, shape index: {}]   ;;  %s2324_s14 = inlined_call_operand.vmem [shape: f32[2,1,32], index: 14, kind: input, shape index: {}]   ;;  %s2325_s15 = inlined_call_operand.vmem [shape: f32[2,1,32], index: 15, kind: input, shape index: {}]   ;;  %s2326_s17 = inlined_call_operand.vmem [shape: f32[1,32], index: 17, kind: input, shape index: {}]   ;;  %s2327_s16 = inlined_call_operand.vmem [shape: f32[32,32], index: 16, kind: input, shape index: {}]   ;;  %s2328_s19 = inlined_call_operand.vmem [shape: f32[1,3], index: 19, kind: input, shape index: {}]   ;;  %s2329_s18 = inlined_call_operand.vmem [shape: f32[32,3], index: 18, kind: input, shape index: {}]   ;;  %s2330_s20 = inlined_call_operand.vmem [shape: f32[2,3], index: 20, kind: output, shape index: {}]  }
   0x1   :  { %2334 = sst [smem:[#allocation2_spill]] %s2310_s0  ;;  %1756 = vrcp.f32 %v1828_v4  ;;  %vm238_vm10 = vcmask 64512  }
   0x2   :  { %2335 = sst [smem:[#allocation3_spill]] %s2311_s2 }
   0x3   :  { %2336 = sst [smem:[#allocation4_spill]] %s2312_s3  ;;  %s1829_s3 = smov 80  }
   0x4   :  { %2337 = sst [smem:[#allocation5_spill]] %s2313_s5  ;;  %s1831_s5 = smov 64  }
   0x5   :  { %2338 = sst [smem:[#allocation6_spill]] %s2314_s4 }
   0x6   :  { %s2339_s23 = sld [smem:[#allocation2_spill]] }
   0x7   :  { %v1757_v5 = vpop.eup %1756  ;;  %s2340_s26 = sld [smem:[#allocation6_spill]] }
   0x8   :  { %v78_v6 = vmul.f32 32.0, %v1757_v5  ;;  %vm82_vm1 = vweird.f32 %v1757_v5  ;;  %s2341_s30 = sld [smem:[#allocation3_spill]] }
   0x9   :  { %s2342_s2 = sld [smem:[#allocation4_spill]] }
   0xa   :  { %v79_v7 = vsub.f32 1.0, %v78_v6  ;;  %s2343_s24 = sld [smem:[#allocation5_spill]] }
   0xc   :  { %v66_v0 = vld [vmem:[%s2339_s23] sm:$0xff]  ;;  %v67_v2 = vld [vmem:[%s2339_s23 + $0x8] sm:$0xff]  ;;  %v80_v8 = vmul.f32 %v1757_v5, %v79_v7 }
   0xd   :  { %v71_v1 = vsel %vm70_vm0, %v66_v0, 0.0  ;;  %v74_v3 = vsel %vm70_vm0, %v67_v2, 0.0  ;;  %v1711_v21 = vld [vmem:[%s2340_s26 + $0x8] sm:$0xff]  ;;  %v1710_v23 = vld [vmem:[%s2340_s26] sm:$0xff] }
   0xe   :  { %72 = vadd.xlane.f32.xlu0 %v71_v1  ;;  %v81_v9 = vadd.f32 %v1757_v5, %v80_v8  ;;  %167 = vmatpush.bf16.msra.mxu0 %v1711_v21  ;;  %v1736_v42 = vld [vmem:[%s2341_s30] ss:$0 sm:$0xff] }
   0xf   :  { %v1737_v47 = vld [vmem:[%s2342_s2] ss:$0 sm:$0xff] }
  0x10   :  { %v1947_v10 = vsel %vm82_vm1, %v1757_v5, %v81_v9  ;;  %v1738_v52 = vld [vmem:[%s2343_s24] ss:$0 sm:$0xff] }
  0x12   :  { %168 = vmatpush.bf16.msra.mxu0 %v1710_v23 }
  0x16   :  { %75 = vadd.xlane.f32.xlu0 %v74_v3 }
  0x81   :  { %v73_v11 = vpop.xlane.xlu0 %72 }
  0x82   :  { %v84_v12 = vmul.f32 %v1947_v10, %v73_v11 }
  0x84   :  { %v86_v13 = vsub.f32 %v66_v0, %v84_v12 }
  0x86   :  { %v88_v14 = vmul.f32 %v86_v13, %v86_v13 }
  0x88   :  { %v90_v15 = vsel %vm70_vm0, %v88_v14, 0.0  ;;  %v132_v14 = vld [vmem:[%s2315_s1] sm:$0x3]  ;;  %s1833_s1 = smov 48  }
  0x89   :  { %91 = vadd.xlane.f32.xlu1 %v90_v15  ;;  %v76_v16 = vpop.xlane.xlu0 %75  ;;  %v133_v15 = vsub.f32 1.0, %v132_v14  ;;  %v1713_v14 = vld [vmem:[%s2316_s6 + $0x8] sm:$0xff] }
  0x8a   :  { %v85_v17 = vmul.f32 %v1947_v10, %v76_v16 }
  0x8b   :  { %v134_v16 = vmul.f32 -10000.0, %v133_v15 }
  0x8c   :  { %v87_v18 = vsub.f32 %v67_v2, %v85_v17 }
  0x8d   :  { %v2010_v17 = vperm.slane %v134_v16, 0  ;;  %v136_v23 = vrot.slane %v134_v16, 1 }
  0x8e   :  { %v89_v19 = vmul.f32 %v87_v18, %v87_v18 }
  0x90   :  { %v93_v20 = vsel %vm70_vm0, %v89_v19, 0.0 }
  0x91   :  { %94 = vadd.xlane.f32.xlu1 %v93_v20 }
  0xfc   :  { %v92_v22 = vpop.xlane.xlu1 %91 }
  0xfd   :  { %v96_v24 = vmul.f32 %v92_v22, %v1947_v10 }
  0xff   :  { %v98_v25 = vadd.f32 1e-12, %v96_v24  ;;  %v2014_v24 = vperm.slane %v136_v23, 0 }
 0x101   :  { %1758 = vrsqrt.f32 %v98_v25  ;;  %vm106_vm3 = vweird.f32 %v98_v25 }
 0x104   :  { %v95_v26 = vpop.xlane.xlu1 %94 }
 0x105   :  { %v97_v27 = vmul.f32 %v95_v26, %v1947_v10 }
 0x107   :  { %v1759_v28 = vpop.eup %1758  ;;  %v99_v29 = vadd.f32 1e-12, %v97_v27 }
 0x108   :  { %v101_v30 = vmul.f32 %v1759_v28, %v98_v25  ;;  %vm107_vm2 = vweird.f32 %v1759_v28 }
 0x109   :  { %1760 = vrsqrt.f32 %v99_v29  ;;  %vm108_vm4 = vmor %vm106_vm3, %vm107_vm2  ;;  %vm116_vm6 = vweird.f32 %v99_v29 }
 0x10a   :  { %v102_v31 = vmul.f32 %v1759_v28, %v101_v30 }
 0x10c   :  { %v103_v32 = vmul.f32 0.5, %v102_v31 }
 0x10e   :  { %v104_v33 = vsub.f32 1.5, %v103_v32 }
 0x10f   :  { %v1761_v34 = vpop.eup %1760 }
 0x110   :  { %v105_v35 = vmul.f32 %v1759_v28, %v104_v33  ;;  %v111_v36 = vmul.f32 %v1761_v34, %v99_v29  ;;  %vm117_vm5 = vweird.f32 %v1761_v34 }
 0x111   :  { %vm118_vm7 = vmor %vm116_vm6, %vm117_vm5 }
 0x112   :  { %v112_v37 = vmul.f32 %v1761_v34, %v111_v36  ;;  %v109_v38 = vsel %vm108_vm4, %v1759_v28, %v105_v35 }
 0x113   :  { %v120_v41 = vmul.f32 %v109_v38, %v86_v13 }
 0x114   :  { %v113_v39 = vmul.f32 0.5, %v112_v37 }
 0x115   :  { %v125_v46 = vmul.f32 %v1736_v42, %v120_v41 }
 0x116   :  { %v114_v40 = vsub.f32 1.5, %v113_v39 }
 0x117   :  { %v1967_v49 = vadd.f32 %v1737_v47, %v125_v46 }
 0x118   :  { %v115_v43 = vmul.f32 %v1761_v34, %v114_v40 }
 0x11a   :  { %v119_v44 = vsel %vm118_vm7, %v1761_v34, %v115_v43 }
 0x11b   :  { %v121_v45 = vmul.f32 %v119_v44, %v87_v18 }
 0x11d   :  { %v126_v48 = vmul.f32 %v1736_v42, %v121_v45 }
 0x11f   :  { %v1969_v50 = vadd.f32 %v1737_v47, %v126_v48 }
 0x121   :  { %v141_v51 = vpack.c.bf16 %v1969_v50, %v1967_v49 }
 0x123   :  { %1582 = vmatmul.msk.bf16.vlgmr.msra.gmra.mxu0 %vm70_vm0, %v141_v51 }
 0x1a0   :  { %v170_v53 = vpop.f32.mrf.mxu0 }
 0x1a1   :  { %v171_v54 = vadd.f32 %v1738_v52, %v170_v53 }
 0x1a3   :  { %v175_v55 = vpack.c.bf16 %v171_v54, %v171_v54 }
 0x1a5   :  { %v182_v56 = vunpack.c.l.b16 %v175_v55 }
 0x1a7   :  { %v1977_v57 = vpack.c.b16 %v182_v56, %v182_v56 }
 0x1a8   :  { %v172_v58 = vpop.f32.mrf.mxu0 }
 0x1a9   :  { %v173_v59 = vadd.f32 %v1738_v52, %v172_v58  ;;  %335 = vrot.lane.b32.xlu0 %v1977_v57, %s1829_s3  ;;  %184 = vrot.lane.b32.xlu2 %v1977_v57, %s1830_s25 }
 0x1ab   :  { %v176_v60 = vpack.c.bf16 %v173_v59, %v173_v59 }
 0x1ad   :  { %v207_v61 = vunpack.c.l.b16 %v176_v60 }
 0x1af   :  { %v1983_v62 = vpack.c.b16 %v207_v61, %v207_v61 }
 0x1b1   :  { %358 = vrot.lane.b32.xlu1 %v1983_v62, %s1829_s3  ;;  %259 = vrot.lane.b32.xlu0 %v1977_v57, %s1831_s5 }
 0x1b2   :  { %209 = vrot.lane.b32.xlu2 %v1983_v62, %s1830_s25 }
 0x1b9   :  { %281 = vrot.lane.b32.xlu0 %v1983_v62, %s1831_s5 }
 0x1ba   :  { %333 = vrot.lane.b32.xlu2 %v1977_v57, %s1832_s27 }
 0x1c2   :  { %356 = vrot.lane.b32.xlu2 %v1983_v62, %s1832_s27 }
 0x203   :  { %v185_v63 = vpop.permute.xlu2 %184 }
 0x204   :  { %v191_v0 = vsel %vm186_vm8, %v185_v63, 0 }
 0x205   :  { %200 = vmatpush.bf16.xpose.msra.mxu1 %v191_v0 }
 0x20c   :  { %v210_v1 = vpop.permute.xlu2 %209  ;;  %1583 = vmatmul.msk.bf16.vlgmr.msra.gmra.mxu1 %vm186_vm8, %v175_v55 }
 0x20d   :  { %v215_v2 = vsel %vm186_vm8, %v210_v1, 0 }
 0x20e   :  { %224 = vmatpush.bf16.xpose.msra.mxu2 %v215_v2 }
 0x214   :  { %v334_v5 = vpop.permute.xlu2 %333 }
 0x215   :  { %1584 = vmatmul.msk.bf16.vlgmr.msra.gmra.mxu2 %vm186_vm8, %v176_v60 }
 0x21b   :  { %v336_v3 = vpop.permute.xlu0 %335 }
 0x21c   :  { %v341_v4 = vsel %vm186_vm8, %v336_v3, 0  ;;  %v357_v11 = vpop.permute.xlu2 %356 }
 0x21d   :  { %350 = vmatpush.bf16.xpose.msrb.mxu0 %v341_v4 }
 0x223   :  { %v359_v6 = vpop.permute.xlu1 %358  ;;  %v260_v7 = vpop.permute.xlu0 %259 }
 0x224   :  { %1587 = vmatmul.msk.bf16.vlgmr.msrb.gmra.mxu0 %vm186_vm8, %v334_v5  ;;  %v266_v8 = vsel %vm264_vm9, %v260_v7, 0  ;;  %v364_v9 = vsel %vm186_vm8, %v359_v6, 0  ;;  %v1712_v7 = vld [vmem:[%s2316_s6] sm:$0xff] }
 0x225   :  { %275 = vmatpush.bf16.msra.mxu3 %v266_v8  ;;  %373 = vmatpush.bf16.xpose.msrb.mxu1 %v364_v9 }
 0x226   :  { %492 = vmatpush.bf16.msra.mxu0 %v1713_v14 }
 0x22b   :  { %v282_v12 = vpop.permute.xlu0 %281 }
 0x22c   :  { %1588 = vmatmul.msk.bf16.vlgmr.msrb.gmra.mxu1 %vm186_vm8, %v357_v11  ;;  %v287_v13 = vsel %vm264_vm9, %v282_v12, 0 }
 0x22d   :  { %296 = vmatpush.bf16.msrb.mxu3 %v287_v13  ;;  %515 = vmatpush.bf16.msra.mxu1 %v1712_v7 }
 0x289   :  { %v202_v18 = vpop.f32.mrf.mxu1 }
 0x28a   :  { %v230_v19 = vmul.f32 0.25, %v202_v18 }
 0x28c   :  { %v236_v20 = vadd.f32 %v2010_v17, %v230_v19 }
 0x28e   :  { %v239_v21 = vsel %vm238_vm10, %v236_v20, -inf }
 0x28f   :  { %240 = vmax.xlane.f32.xlu2 %v239_v21 }
 0x291   :  { %v204_v22 = vpop.f32.mrf.mxu1 }
 0x298   :  { %v226_v25 = vpop.f32.mrf.mxu2 }
 0x299   :  { %v231_v26 = vmul.f32 0.25, %v226_v25 }
 0x29b   :  { %v237_v27 = vadd.f32 %v2014_v24, %v231_v26 }
 0x29d   :  { %v242_v28 = vsel %vm238_vm10, %v237_v27, -inf }
 0x29e   :  { %243 = vmax.xlane.f32.xlu1 %v242_v28 }
 0x2a0   :  { %v228_v29 = vpop.f32.mrf.mxu2 }
 0x2a1   :  { %v352_v30 = vpop.f32.mrf.mxu0 }
 0x2a2   :  { %v379_v31 = vmul.f32 0.25, %v352_v30 }
 0x2a4   :  { %v381_v32 = vadd.f32 %v379_v31, %v2010_v17 }
 0x2a6   :  { %v383_v33 = vsel %vm238_vm10, %v381_v32, -inf }
 0x2a7   :  { %384 = vmax.xlane.f32.xlu0 %v383_v33 }
 0x2a9   :  { %v354_v34 = vpop.f32.mrf.mxu0  ;;  %v375_v35 = vpop.f32.mrf.mxu1 }
 0x2aa   :  { %v380_v36 = vmul.f32 0.25, %v375_v35 }
 0x2ac   :  { %v382_v37 = vadd.f32 %v380_v36, %v2014_v24 }
 0x2ae   :  { %v386_v38 = vsel %vm238_vm10, %v382_v37, -inf }
 0x2af   :  { %387 = vmax.xlane.f32.xlu2 %v386_v38 }
 0x2b1   :  { %v377_v39 = vpop.f32.mrf.mxu1 }
 0x2b7   :  { %424 = vrot.lane.b32.xlu1 %v1983_v62, %s1833_s1 }
 0x2c7   :  { %403 = vrot.lane.b32.xlu2 %v1977_v57, %s1833_s1 }
 0x302   :  { %v241_v40 = vpop.xlane.xlu2 %240 }
 0x303   :  { %v245_v41 = vsub.f32 %v236_v20, %v241_v40 }
 0x305   :  { %v247_v42 = vmul.f32 1.442695, %v245_v41 }
 0x307   :  { %1762 = vpow2.f32 %v247_v42 }
 0x30d   :  { %v1763_v43 = vpop.eup %1762 }
 0x30e   :  { %v251_v44 = vsel %vm238_vm10, %v1763_v43, 0.0  ;;  %v257_v45 = vpack.c.bf16 %v1763_v43, %v1763_v43 }
 0x30f   :  { %252 = vadd.xlane.f32.xlu0 %v251_v44 }
 0x310   :  { %1585 = vmatmul.msk.bf16.vlgmr.msra.gmra.mxu3 %vm238_vm10, %v257_v45 }
 0x311   :  { %v244_v46 = vpop.xlane.xlu1 %243 }
 0x312   :  { %v246_v47 = vsub.f32 %v237_v27, %v244_v46 }
 0x314   :  { %v249_v48 = vmul.f32 1.442695, %v246_v47 }
 0x316   :  { %1764 = vpow2.f32 %v249_v48 }
 0x31a   :  { %v385_v51 = vpop.xlane.xlu0 %384 }
 0x31b   :  { %v389_v52 = vsub.f32 %v381_v32, %v385_v51 }
 0x31c   :  { %v1765_v53 = vpop.eup %1764 }
 0x31d   :  { %v391_v54 = vmul.f32 1.442695, %v389_v52  ;;  %v254_v55 = vsel %vm238_vm10, %v1765_v53, 0.0  ;;  %v258_v56 = vpack.c.bf16 %v1765_v53, %v1765_v53 }
 0x31e   :  { %255 = vadd.xlane.f32.xlu0 %v254_v55 }
 0x31f   :  { %1766 = vpow2.f32 %v391_v54 }
 0x320   :  { %1586 = vmatmul.msk.bf16.vlgmr.msrb.gmra.mxu3 %vm238_vm10, %v258_v56 }
 0x322   :  { %v388_v57 = vpop.xlane.xlu2 %387 }
 0x323   :  { %v390_v58 = vsub.f32 %v382_v37, %v388_v57 }
 0x325   :  { %v1767_v59 = vpop.eup %1766  ;;  %v393_v60 = vmul.f32 1.442695, %v390_v58 }
 0x326   :  { %v395_v61 = vsel %vm238_vm10, %v1767_v59, 0.0  ;;  %v401_v3 = vpack.c.bf16 %v1767_v59, %v1767_v59 }
 0x327   :  { %1768 = vpow2.f32 %v393_v60  ;;  %396 = vadd.xlane.f32.xlu2 %v395_v61 }
 0x329   :  { %v425_v62 = vpop.permute.xlu1 %424 }
 0x32a   :  { %v430_v63 = vsel %vm264_vm9, %v425_v62, 0  ;;  %v404_v0 = vpop.permute.xlu2 %403 }
 0x32b   :  { %439 = vmatpush.bf16.msra.mxu3 %v430_v63  ;;  %v409_v1 = vsel %vm264_vm9, %v404_v0, 0 }
 0x32c   :  { %418 = vmatpush.bf16.msrb.mxu2 %v409_v1 }
 0x32d   :  { %v1769_v2 = vpop.eup %1768 }
 0x32e   :  { %v402_v4 = vpack.c.bf16 %v1769_v2, %v1769_v2  ;;  %v398_v5 = vsel %vm238_vm10, %v1769_v2, 0.0 }
 0x32f   :  { %399 = vadd.xlane.f32.xlu1 %v398_v5  ;;  %1589 = vmatmul.msk.bf16.vlgmr.msrb.gmra.mxu2 %vm238_vm10, %v401_v3 }
 0x330   :  { %1590 = vmatmul.msk.bf16.vlgmr.msra.gmra.mxu3 %vm238_vm10, %v402_v4 }
 0x382   :  { %v253_v6 = vpop.xlane.xlu0 %252 }
 0x383   :  { %1770 = vrcp.f32 %v253_v6  ;;  %v313_v22 = vand.u32 2147483648, %v253_v6  ;;  %vm307_vm12 = vweird.f32 %v253_v6  ;;  %v311_v25 = vand.u32 2147483647, %v253_v6 }
 0x385   :  { %v314_v30 = vor.u32 1.1754944e-38, %v313_v22  ;;  %vm312_vm1 = vcmp.eq.f32.partialorder %v311_v25, 8.507059e+37 }
 0x389   :  { %v1771_v8 = vpop.eup %1770 }
 0x38a   :  { %v303_v9 = vmul.f32 %v1771_v8, %v253_v6  ;;  %vm308_vm11 = vweird.f32 %v1771_v8 }
 0x38b   :  { %vm309_vm13 = vmor %vm307_vm12, %vm308_vm11 }
 0x38c   :  { %v304_v12 = vsub.f32 1.0, %v303_v9 }
 0x38e   :  { %v305_v15 = vmul.f32 %v1771_v8, %v304_v12 }
 0x390   :  { %v306_v19 = vadd.f32 %v1771_v8, %v305_v15 }
 0x391   :  { %v256_v11 = vpop.xlane.xlu0 %255 }
 0x392   :  { %1772 = vrcp.f32 %v256_v11  ;;  %v328_v27 = vand.u32 2147483648, %v256_v11  ;;  %v310_v28 = vsel %vm309_vm13, %v1771_v8, %v306_v19  ;;  %v326_v29 = vand.u32 2147483647, %v256_v11  ;;  %v1739_v8 = vld [vmem:[%s2317_s7] ss:$0 sm:$0xff] }
 0x393   :  { %v277_v13 = vpop.f32.mrf.mxu3  ;;  %vm322_vm15 = vweird.f32 %v256_v11  ;;  %v315_v33 = vsel %vm312_vm1, %v314_v30, %v310_v28 }
 0x394   :  { %v329_v35 = vor.u32 1.1754944e-38, %v328_v27  ;;  %vm327_vm3 = vcmp.eq.f32.partialorder %v326_v29, 8.507059e+37  ;;  %v316_v40 = vmul.f32 %v315_v33, %v277_v13 }
 0x398   :  { %v1773_v16 = vpop.eup %1772 }
 0x399   :  { %v318_v18 = vmul.f32 %v1773_v16, %v256_v11  ;;  %vm323_vm14 = vweird.f32 %v1773_v16 }
 0x39a   :  { %v397_v20 = vpop.xlane.xlu2 %396  ;;  %vm324_vm2 = vmor %vm322_vm15, %vm323_vm14 }
 0x39b   :  { %v319_v21 = vsub.f32 1.0, %v318_v18  ;;  %1774 = vrcp.f32 %v397_v20  ;;  %v279_v23 = vpop.f32.mrf.mxu3  ;;  %v456_v52 = vand.u32 2147483648, %v397_v20  ;;  %vm450_vm5 = vweird.f32 %v397_v20 }
 0x39c   :  { %v454_v53 = vand.u32 2147483647, %v397_v20 }
 0x39d   :  { %v320_v26 = vmul.f32 %v1773_v16, %v319_v21  ;;  %v457_v58 = vor.u32 1.1754944e-38, %v456_v52 }
 0x39e   :  { %vm455_vm12 = vcmp.eq.f32.partialorder %v454_v53, 8.507059e+37  ;;  %v1740_v53 = vld [vmem:[%s2318_s8] ss:$0 sm:$0xff] }
 0x39f   :  { %v321_v31 = vadd.f32 %v1773_v16, %v320_v26 }
 0x3a1   :  { %v1775_v32 = vpop.eup %1774  ;;  %v325_v34 = vsel %vm324_vm2, %v1773_v16, %v321_v31 }
 0x3a2   :  { %v446_v36 = vmul.f32 %v1775_v32, %v397_v20  ;;  %v400_v37 = vpop.xlane.xlu1 %399  ;;  %v330_v39 = vsel %vm327_vm3, %v329_v35, %v325_v34  ;;  %vm451_vm4 = vweird.f32 %v1775_v32  ;;  %v1714_v35 = vld [vmem:[%s2321_s10] sm:$0xff] }
 0x3a3   :  { %1776 = vrcp.f32 %v400_v37  ;;  %v298_v38 = vpop.f32.mrf.mxu3  ;;  %v471_v54 = vand.u32 2147483648, %v400_v37  ;;  %vm452_vm6 = vmor %vm450_vm5, %vm451_vm4  ;;  %v469_v56 = vand.u32 2147483647, %v400_v37  ;;  %vm465_vm11 = vweird.f32 %v400_v37 }
 0x3a4   :  { %v447_v41 = vsub.f32 1.0, %v446_v36  ;;  %v331_v42 = vmul.f32 %v330_v39, %v298_v38 }
 0x3a5   :  { %v472_v60 = vor.u32 1.1754944e-38, %v471_v54  ;;  %vm470_vm14 = vcmp.eq.f32.partialorder %v469_v56, 8.507059e+37 }
 0x3a6   :  { %v332_v43 = vpack.c.bf16 %v331_v42, %v316_v40  ;;  %v448_v44 = vmul.f32 %v1775_v32, %v447_v41 }
 0x3a8   :  { %1600 = vmatmul.msk.bf16.vlgmr.msra.gmra.mxu1 %vm186_vm8, %v332_v43  ;;  %v449_v48 = vadd.f32 %v1775_v32, %v448_v44 }
 0x3a9   :  { %v1777_v45 = vpop.eup %1776 }
 0x3aa   :  { %v461_v46 = vmul.f32 %v1777_v45, %v400_v37  ;;  %vm466_vm7 = vweird.f32 %v1777_v45  ;;  %v453_v57 = vsel %vm452_vm6, %v1775_v32, %v449_v48  ;;  %v1715_v32 = vld [vmem:[%s2321_s10 + $0x8] sm:$0xff] }
 0x3ab   :  { %v300_v47 = vpop.f32.mrf.mxu3  ;;  %vm467_vm13 = vmor %vm465_vm11, %vm466_vm7  ;;  %v458_v62 = vsel %vm455_vm12, %v457_v58, %v453_v57  ;;  %616 = vmatpush.bf16.msra.mxu2 %v1715_v32  ;;  %v1741_v57 = vld [vmem:[%s2319_s9] ss:$0 sm:$0xff] }
 0x3ac   :  { %v462_v51 = vsub.f32 1.0, %v461_v46 }
 0x3ae   :  { %v463_v55 = vmul.f32 %v1777_v45, %v462_v51 }
 0x3af   :  { %617 = vmatpush.bf16.msra.mxu2 %v1714_v35 }
 0x3b0   :  { %v464_v59 = vadd.f32 %v1777_v45, %v463_v55 }
 0x3b2   :  { %v420_v61 = vpop.f32.mrf.mxu2  ;;  %v468_v63 = vsel %vm467_vm13, %v1777_v45, %v464_v59 }
 0x3b3   :  { %v459_v0 = vmul.f32 %v458_v62, %v420_v61  ;;  %v441_v1 = vpop.f32.mrf.mxu3  ;;  %v473_v2 = vsel %vm470_vm14, %v472_v60, %v468_v63 }
 0x3b4   :  { %v474_v3 = vmul.f32 %v473_v2, %v441_v1 }
 0x3b6   :  { %v475_v4 = vpack.c.bf16 %v474_v3, %v459_v0  ;;  %v1742_v0 = vld [vmem:[%s2320_s11] ss:$0 sm:$0xff] }
 0x3b8   :  { %1595 = vmatmul.msk.bf16.vlgmr.msra.gmra.mxu0 %vm186_vm8, %v475_v4 }
 0x3ba   :  { %v422_v5 = vpop.f32.mrf.mxu2 }
 0x3bb   :  { %v443_v6 = vpop.f32.mrf.mxu3 }
 0x425   :  { %v517_v7 = vpop.f32.mrf.mxu1 }
 0x42d   :  { %v519_v15 = vpop.f32.mrf.mxu1 }
 0x435   :  { %v494_v9 = vpop.f32.mrf.mxu0 }
 0x436   :  { %v518_v11 = vadd.f32 %v517_v7, %v494_v9 }
 0x438   :  { %v526_v12 = vadd.f32 %v1739_v8, %v518_v11 }
 0x43a   :  { %v528_v13 = vadd.f32 %v526_v12, %v1967_v49 }
 0x43c   :  { %v532_v14 = vsel %vm70_vm0, %v528_v13, 0.0 }
 0x43d   :  { %533 = vadd.xlane.f32.xlu0 %v532_v14  ;;  %v496_v16 = vpop.f32.mrf.mxu0 }
 0x43e   :  { %v520_v18 = vadd.f32 %v519_v15, %v496_v16 }
 0x440   :  { %v527_v19 = vadd.f32 %v1739_v8, %v520_v18  ;;  %v1719_v18 = vld [vmem:[%s2323_s12 + $0x18] sm:$0xff] }
 0x441   :  { %749 = vmatpush.bf16.msrb.mxu3 %v1719_v18 }
 0x442   :  { %v529_v20 = vadd.f32 %v527_v19, %v1969_v50 }
 0x444   :  { %v535_v21 = vsel %vm70_vm0, %v529_v20, 0.0 }
 0x445   :  { %536 = vadd.xlane.f32.xlu0 %v535_v21 }
 0x4b0   :  { %v534_v22 = vpop.xlane.xlu0 %533 }
 0x4b1   :  { %v538_v23 = vmul.f32 %v534_v22, %v1947_v10 }
 0x4b3   :  { %v540_v25 = vsub.f32 %v528_v13, %v538_v23  ;;  %v1718_v23 = vld [vmem:[%s2323_s12 + $0x10] sm:$0xff] }
 0x4b4   :  { %750 = vmatpush.bf16.msrb.mxu3 %v1718_v23 }
 0x4b5   :  { %v542_v26 = vmul.f32 %v540_v25, %v540_v25 }
 0x4b7   :  { %v544_v27 = vsel %vm70_vm0, %v542_v26, 0.0 }
 0x4b8   :  { %545 = vadd.xlane.f32.xlu0 %v544_v27  ;;  %v537_v49 = vpop.xlane.xlu0 %536 }
 0x4b9   :  { %v539_v28 = vmul.f32 %v537_v49, %v1947_v10 }
 0x4bb   :  { %v541_v29 = vsub.f32 %v529_v20, %v539_v28 }
 0x4bd   :  { %v543_v30 = vmul.f32 %v541_v29, %v541_v29 }
 0x4bf   :  { %v547_v31 = vsel %vm70_vm0, %v543_v30, 0.0 }
 0x4c0   :  { %548 = vadd.xlane.f32.xlu0 %v547_v31  ;;  %v1717_v31 = vld [vmem:[%s2323_s12 + $0x8] sm:$0xff] }
 0x4c1   :  { %751 = vmatpush.bf16.msrb.mxu3 %v1717_v31 }
 0x52b   :  { %v546_v50 = vpop.xlane.xlu0 %545 }
 0x52c   :  { %v550_v33 = vmul.f32 %v546_v50, %v1947_v10 }
 0x52e   :  { %v552_v34 = vadd.f32 1e-12, %v550_v33 }
 0x530   :  { %1778 = vrsqrt.f32 %v552_v34  ;;  %vm560_vm1 = vweird.f32 %v552_v34 }
 0x533   :  { %v549_v36 = vpop.xlane.xlu0 %548 }
 0x534   :  { %v551_v37 = vmul.f32 %v549_v36, %v1947_v10 }
 0x536   :  { %v1779_v38 = vpop.eup %1778  ;;  %v553_v39 = vadd.f32 1e-12, %v551_v37 }
 0x537   :  { %v555_v40 = vmul.f32 %v1779_v38, %v552_v34  ;;  %vm561_vm15 = vweird.f32 %v1779_v38 }
 0x538   :  { %1780 = vrsqrt.f32 %v553_v39  ;;  %vm562_vm2 = vmor %vm560_vm1, %vm561_vm15  ;;  %vm570_vm4 = vweird.f32 %v553_v39 }
 0x539   :  { %v556_v41 = vmul.f32 %v1779_v38, %v555_v40 }
 0x53b   :  { %v557_v42 = vmul.f32 0.5, %v556_v41 }
 0x53d   :  { %v558_v43 = vsub.f32 1.5, %v557_v42 }
 0x53e   :  { %v1781_v44 = vpop.eup %1780 }
 0x53f   :  { %v559_v45 = vmul.f32 %v1779_v38, %v558_v43  ;;  %v565_v46 = vmul.f32 %v1781_v44, %v553_v39  ;;  %vm571_vm3 = vweird.f32 %v1781_v44 }
 0x540   :  { %vm572_vm5 = vmor %vm570_vm4, %vm571_vm3  ;;  %vm741_vm4 = vcmask 523264  }
 0x541   :  { %v566_v47 = vmul.f32 %v1781_v44, %v565_v46  ;;  %v563_v48 = vsel %vm562_vm2, %v1779_v38, %v559_v45  ;;  %v1716_v38 = vld [vmem:[%s2323_s12] sm:$0xff] }
 0x542   :  { %v574_v54 = vmul.f32 %v563_v48, %v540_v25  ;;  %752 = vmatpush.bf16.msrb.mxu3 %v1716_v38 }
 0x543   :  { %v567_v51 = vmul.f32 0.5, %v566_v47 }
 0x544   :  { %v579_v58 = vmul.f32 %v1740_v53, %v574_v54 }
 0x545   :  { %v568_v52 = vsub.f32 1.5, %v567_v51 }
 0x546   :  { %v2069_v61 = vadd.f32 %v1741_v57, %v579_v58 }
 0x547   :  { %v569_v55 = vmul.f32 %v1781_v44, %v568_v52 }
 0x549   :  { %v573_v56 = vsel %vm572_vm5, %v1781_v44, %v569_v55 }
 0x54a   :  { %v575_v59 = vmul.f32 %v573_v56, %v541_v29 }
 0x54c   :  { %v580_v60 = vmul.f32 %v1740_v53, %v575_v59 }
 0x54e   :  { %v2071_v62 = vadd.f32 %v1741_v57, %v580_v60 }
 0x550   :  { %v590_v63 = vpack.c.bf16 %v2071_v62, %v2069_v61 }
 0x552   :  { %1609 = vmatmul.msk.bf16.vlgmr.msra.gmra.mxu2 %vm70_vm0, %v590_v63 }
 0x5d5   :  { %v619_v1 = vpop.f32.mrf.mxu2 }
 0x5d6   :  { %v2079_v2 = vadd.f32 %v1742_v0, %v619_v1 }
 0x5d8   :  { %v2082_v3 = vmul.f32 0.70710677, %v2079_v2 }
 0x5da   :  { %v628_v4 = vand.u32 2147483647, %v2082_v3  ;;  %vm694_vm2 = vcmp.ge.f32.partialorder %v2082_v3, 0.0  ;;  %v1743_v3 = vld [vmem:[%s2322_s13] ss:$0 sm:$0xff] }
 0x5dc   :  { %v630_v5 = vmul.f32 0.3275911, %v628_v4  ;;  %v682_v28 = vsub.f32 0.0, %v628_v4 }
 0x5dd   :  { %v621_v6 = vpop.f32.mrf.mxu2 }
 0x5de   :  { %v632_v7 = vadd.f32 1.0, %v630_v5  ;;  %v2085_v8 = vadd.f32 %v1742_v0, %v621_v6  ;;  %v684_v34 = vmul.f32 %v682_v28, %v628_v4 }
 0x5e0   :  { %1782 = vrcp.f32 %v632_v7  ;;  %v2088_v9 = vmul.f32 0.70710677, %v2085_v8  ;;  %v645_v19 = vand.u32 2147483648, %v632_v7  ;;  %v643_v21 = vand.u32 2147483647, %v632_v7 }
 0x5e1   :  { %vm639_vm7 = vweird.f32 %v632_v7  ;;  %v686_v42 = vmul.f32 1.442695, %v684_v34 }
 0x5e2   :  { %v629_v11 = vand.u32 2147483647, %v2088_v9  ;;  %v646_v25 = vor.u32 1.1754944e-38, %v645_v19  ;;  %vm644_vm12 = vcmp.eq.f32.partialorder %v643_v21, 8.507059e+37  ;;  %vm695_vm3 = vcmp.ge.f32.partialorder %v2088_v9, 0.0 }
 0x5e3   :  { %v624_v19 = vmul.f32 0.5, %v2079_v2 }
 0x5e4   :  { %v631_v12 = vmul.f32 0.3275911, %v629_v11  ;;  %v683_v46 = vsub.f32 0.0, %v629_v11 }
 0x5e6   :  { %v1783_v13 = vpop.eup %1782  ;;  %v633_v15 = vadd.f32 1.0, %v631_v12  ;;  %v685_v53 = vmul.f32 %v683_v46, %v629_v11 }
 0x5e7   :  { %v635_v14 = vmul.f32 %v1783_v13, %v632_v7  ;;  %vm640_vm6 = vweird.f32 %v1783_v13 }
 0x5e8   :  { %1784 = vrcp.f32 %v633_v15  ;;  %vm641_vm11 = vmor %vm639_vm7, %vm640_vm6  ;;  %v660_v33 = vand.u32 2147483648, %v633_v15  ;;  %v658_v36 = vand.u32 2147483647, %v633_v15  ;;  %vm654_vm14 = vweird.f32 %v633_v15 }
 0x5e9   :  { %v636_v16 = vsub.f32 1.0, %v635_v14  ;;  %1786 = vpow2.f32 %v686_v42  ;;  %v688_v58 = vmul.f32 1.442695, %v685_v53 }
 0x5ea   :  { %v661_v41 = vor.u32 1.1754944e-38, %v660_v33  ;;  %vm659_vm1 = vcmp.eq.f32.partialorder %v658_v36, 8.507059e+37 }
 0x5eb   :  { %v637_v20 = vmul.f32 %v1783_v13, %v636_v16  ;;  %1788 = vpow2.f32 %v688_v58 }
 0x5ed   :  { %v638_v22 = vadd.f32 %v1783_v13, %v637_v20  ;;  %v625_v20 = vmul.f32 0.5, %v2085_v8 }
 0x5ee   :  { %v1785_v26 = vpop.eup %1784 }
 0x5ef   :  { %v642_v27 = vsel %vm641_vm11, %v1783_v13, %v638_v22  ;;  %v650_v29 = vmul.f32 %v1785_v26, %v633_v15  ;;  %vm655_vm13 = vweird.f32 %v1785_v26  ;;  %v1787_v59 = vpop.eup %1786 }
 0x5f0   :  { %v647_v49 = vsel %vm644_vm12, %v646_v25, %v642_v27  ;;  %vm656_vm15 = vmor %vm654_vm14, %vm655_vm13 }
 0x5f1   :  { %v664_v30 = vmul.f32 1.0614054, %v647_v49  ;;  %v651_v50 = vsub.f32 1.0, %v650_v29  ;;  %v1789_v12 = vpop.eup %1788 }
 0x5f3   :  { %v666_v32 = vadd.f32 -1.4531521, %v664_v30  ;;  %v652_v35 = vmul.f32 %v1785_v26, %v651_v50 }
 0x5f5   :  { %v668_v37 = vmul.f32 %v666_v32, %v647_v49  ;;  %v653_v39 = vadd.f32 %v1785_v26, %v652_v35 }
 0x5f7   :  { %v670_v40 = vadd.f32 1.4214138, %v668_v37  ;;  %v657_v43 = vsel %vm656_vm15, %v1785_v26, %v653_v39 }
 0x5f8   :  { %v662_v45 = vsel %vm659_vm1, %v661_v41, %v657_v43  ;;  %v1720_v41 = vld [vmem:[%s2340_s26 + $0x10] sm:$0xff] }
 0x5f9   :  { %v672_v44 = vmul.f32 %v670_v40, %v647_v49  ;;  %v665_v47 = vmul.f32 1.0614054, %v662_v45 }
 0x5fb   :  { %v674_v48 = vadd.f32 -0.28449672, %v672_v44  ;;  %v667_v51 = vadd.f32 -1.4531521, %v665_v47 }
 0x5fd   :  { %v676_v52 = vmul.f32 %v674_v48, %v647_v49  ;;  %v669_v54 = vmul.f32 %v667_v51, %v662_v45 }
 0x5ff   :  { %v678_v55 = vadd.f32 0.2548296, %v676_v52  ;;  %v671_v56 = vadd.f32 1.4214138, %v669_v54 }
 0x601   :  { %v680_v57 = vmul.f32 %v678_v55, %v647_v49  ;;  %v673_v60 = vmul.f32 %v671_v56, %v662_v45 }
 0x603   :  { %v690_v63 = vmul.f32 %v1787_v59, %v680_v57  ;;  %v675_v0 = vadd.f32 -0.28449672, %v673_v60  ;;  %v1744_v59 = vld [vmem:[%s2324_s14] ss:$0 sm:$0xff] }
 0x605   :  { %v692_v1 = vsub.f32 1.0, %v690_v63  ;;  %v677_v4 = vmul.f32 %v675_v0, %v662_v45 }
 0x607   :  { %v679_v5 = vadd.f32 0.2548296, %v677_v4  ;;  %v696_v6 = vsub.f32 0.0, %v692_v1 }
 0x609   :  { %v681_v7 = vmul.f32 %v679_v5, %v662_v45  ;;  %v698_v11 = vsel %vm694_vm2, %v692_v1, %v696_v6  ;;  %v1745_v1 = vld [vmem:[%s2325_s15] ss:$0 sm:$0xff] }
 0x60a   :  { %v700_v16 = vadd.f32 1.0, %v698_v11  ;;  %v1746_v11 = vld [vmem:[%s2343_s24 + $0x1] ss:$0 sm:$0xff] }
 0x60b   :  { %v691_v13 = vmul.f32 %v1789_v12, %v681_v7 }
 0x60c   :  { %v702_v22 = vmul.f32 %v700_v16, %v624_v19 }
 0x60d   :  { %v693_v14 = vsub.f32 1.0, %v691_v13 }
 0x60f   :  { %v697_v15 = vsub.f32 0.0, %v693_v14 }
 0x611   :  { %v699_v18 = vsel %vm695_vm3, %v693_v14, %v697_v15 }
 0x612   :  { %v701_v21 = vadd.f32 1.0, %v699_v18 }
 0x614   :  { %v703_v23 = vmul.f32 %v701_v21, %v625_v20 }
 0x616   :  { %v712_v25 = vpack.c.bf16 %v703_v23, %v702_v22 }
 0x618   :  { %1626 = vmatmul.msk.bf16.vlgmr.msrb.gmra.mxu3 %vm741_vm4, %v712_v25 }
 0x69b   :  { %v754_v26 = vpop.f32.mrf.mxu3 }
 0x69c   :  { %v755_v27 = vadd.f32 %v1743_v3, %v754_v26 }
 0x69e   :  { %v759_v9 = vadd.f32 %v755_v27, %v2069_v61 }
 0x6a0   :  { %v763_v49 = vsel %vm70_vm0, %v759_v9, 0.0 }
 0x6a1   :  { %764 = vadd.xlane.f32.xlu0 %v763_v49 }
 0x6a3   :  { %v756_v2 = vpop.f32.mrf.mxu3 }
 0x6a4   :  { %v757_v8 = vadd.f32 %v1743_v3, %v756_v2 }
 0x6a6   :  { %v760_v28 = vadd.f32 %v757_v8, %v2071_v62  ;;  %v1721_v62 = vld [vmem:[%s2340_s26 + $0x18] sm:$0xff] }
 0x6a7   :  { %849 = vmatpush.bf16.msrb.mxu0 %v1721_v62 }
 0x6a8   :  { %v766_v29 = vsel %vm70_vm0, %v760_v28, 0.0 }
 0x6a9   :  { %767 = vadd.xlane.f32.xlu2 %v766_v29 }
 0x6ab   :  { %850 = vmatpush.bf16.msrb.mxu0 %v1720_v41 }
 0x714   :  { %v765_v30 = vpop.xlane.xlu0 %764 }
 0x715   :  { %v769_v31 = vmul.f32 %v765_v30, %v1947_v10 }
 0x717   :  { %v771_v50 = vsub.f32 %v759_v9, %v769_v31 }
 0x719   :  { %v773_v32 = vmul.f32 %v771_v50, %v771_v50 }
 0x71b   :  { %v775_v33 = vsel %vm70_vm0, %v773_v32, 0.0 }
 0x71c   :  { %v768_v34 = vpop.xlane.xlu2 %767  ;;  %776 = vadd.xlane.f32.xlu0 %v775_v33 }
 0x71d   :  { %v770_v61 = vmul.f32 %v768_v34, %v1947_v10 }
 0x71f   :  { %v772_v35 = vsub.f32 %v760_v28, %v770_v61 }
 0x721   :  { %v774_v36 = vmul.f32 %v772_v35, %v772_v35 }
 0x723   :  { %v778_v37 = vsel %vm70_vm0, %v774_v36, 0.0 }
 0x724   :  { %779 = vadd.xlane.f32.xlu1 %v778_v37 }
 0x78f   :  { %v777_v38 = vpop.xlane.xlu0 %776 }
 0x790   :  { %v781_v39 = vmul.f32 %v777_v38, %v1947_v10 }
 0x792   :  { %v783_v40 = vadd.f32 1e-12, %v781_v39 }
 0x794   :  { %1790 = vrsqrt.f32 %v783_v40  ;;  %vm791_vm6 = vweird.f32 %v783_v40 }
 0x797   :  { %v780_v42 = vpop.xlane.xlu1 %779 }
 0x798   :  { %v782_v43 = vmul.f32 %v780_v42, %v1947_v10 }
 0x79a   :  { %v1791_v44 = vpop.eup %1790  ;;  %v784_v45 = vadd.f32 1e-12, %v782_v43 }
 0x79b   :  { %v786_v46 = vmul.f32 %v1791_v44, %v783_v40  ;;  %vm792_vm5 = vweird.f32 %v1791_v44 }
 0x79c   :  { %1792 = vrsqrt.f32 %v784_v45  ;;  %vm793_vm7 = vmor %vm791_vm6, %vm792_vm5  ;;  %vm801_vm12 = vweird.f32 %v784_v45 }
 0x79d   :  { %v787_v47 = vmul.f32 %v1791_v44, %v786_v46 }
 0x79f   :  { %v788_v48 = vmul.f32 0.5, %v787_v47 }
 0x7a1   :  { %v789_v51 = vsub.f32 1.5, %v788_v48 }
 0x7a2   :  { %v1793_v52 = vpop.eup %1792 }
 0x7a3   :  { %v790_v53 = vmul.f32 %v1791_v44, %v789_v51  ;;  %v796_v54 = vmul.f32 %v1793_v52, %v784_v45  ;;  %vm802_vm11 = vweird.f32 %v1793_v52 }
 0x7a4   :  { %vm803_vm13 = vmor %vm801_vm12, %vm802_vm11 }
 0x7a5   :  { %v797_v55 = vmul.f32 %v1793_v52, %v796_v54  ;;  %v794_v56 = vsel %vm793_vm7, %v1791_v44, %v790_v53 }
 0x7a6   :  { %v805_v60 = vmul.f32 %v794_v56, %v771_v50 }
 0x7a7   :  { %v798_v57 = vmul.f32 0.5, %v797_v55 }
 0x7a8   :  { %v810_v4 = vmul.f32 %v1744_v59, %v805_v60 }
 0x7a9   :  { %v799_v58 = vsub.f32 1.5, %v798_v57 }
 0x7aa   :  { %v2133_v7 = vadd.f32 %v1745_v1, %v810_v4 }
 0x7ab   :  { %v800_v63 = vmul.f32 %v1793_v52, %v799_v58 }
 0x7ad   :  { %v804_v0 = vsel %vm803_vm13, %v1793_v52, %v800_v63 }
 0x7ae   :  { %v806_v5 = vmul.f32 %v804_v0, %v772_v35 }
 0x7b0   :  { %v811_v6 = vmul.f32 %v1744_v59, %v806_v5 }
 0x7b2   :  { %v2135_v12 = vadd.f32 %v1745_v1, %v811_v6 }
 0x7b4   :  { %v822_v13 = vpack.c.bf16 %v2135_v12, %v2133_v7 }
 0x7b6   :  { %1640 = vmatmul.msk.bf16.vlgmr.msrb.gmra.mxu0 %vm70_vm0, %v822_v13 }
 0x833   :  { %v852_v14 = vpop.f32.mrf.mxu0 }
 0x834   :  { %v853_v15 = vadd.f32 %v1746_v11, %v852_v14 }
 0x836   :  { %v857_v16 = vpack.c.bf16 %v853_v15, %v853_v15 }
 0x838   :  { %v865_v18 = vunpack.c.l.b16 %v857_v16 }
 0x83a   :  { %v866_v19 = vpack.c.b16 %v865_v18, %v865_v18 }
 0x83b   :  { %v854_v20 = vpop.f32.mrf.mxu0 }
 0x83c   :  { %v855_v21 = vadd.f32 %v1746_v11, %v854_v20  ;;  %1011 = vrot.lane.b32.xlu1 %v866_v19, %s1829_s3  ;;  %867 = vrot.lane.b32.xlu2 %v866_v19, %s1830_s25 }
 0x83e   :  { %v858_v22 = vpack.c.bf16 %v855_v21, %v855_v21 }
 0x840   :  { %v889_v23 = vunpack.c.l.b16 %v858_v22 }
 0x842   :  { %v890_v25 = vpack.c.b16 %v889_v23, %v889_v23 }
 0x844   :  { %891 = vrot.lane.b32.xlu0 %v890_v25, %s1830_s25  ;;  %1032 = vrot.lane.b32.xlu1 %v890_v25, %s1832_s27 }
 0x845   :  { %1009 = vrot.lane.b32.xlu2 %v866_v19, %s1832_s27 }
 0x84c   :  { %1034 = vrot.lane.b32.xlu0 %v890_v25, %s1829_s3  ;;  %936 = vrot.lane.b32.xlu1 %v866_v19, %s1831_s5 }
 0x854   :  { %957 = vrot.lane.b32.xlu1 %v890_v25, %s1831_s5 }
 0x896   :  { %v868_v3 = vpop.permute.xlu2 %867 }
 0x897   :  { %v873_v26 = vsel %vm186_vm8, %v868_v3, 0 }
 0x898   :  { %882 = vmatpush.bf16.xpose.msrb.mxu1 %v873_v26 }
 0x89f   :  { %1645 = vmatmul.msk.bf16.vlgmr.msrb.gmra.mxu1 %vm186_vm8, %v857_v16  ;;  %v1010_v49 = vpop.permute.xlu2 %1009 }
 0x8ae   :  { %v1012_v27 = vpop.permute.xlu1 %1011 }
 0x8af   :  { %v1017_v9 = vsel %vm186_vm8, %v1012_v27, 0 }
 0x8b0   :  { %1026 = vmatpush.bf16.xpose.msra.mxu1 %v1017_v9  ;;  %v1722_v9 = vld [vmem:[%s2316_s6 + $0x10] sm:$0xff] }
 0x8b6   :  { %v892_v2 = vpop.permute.xlu0 %891  ;;  %v1033_v8 = vpop.permute.xlu1 %1032 }
 0x8b7   :  { %v897_v28 = vsel %vm186_vm8, %v892_v2, 0  ;;  %1649 = vmatmul.msk.bf16.vlgmr.msra.gmra.mxu1 %vm186_vm8, %v1010_v49 }
 0x8b8   :  { %906 = vmatpush.bf16.xpose.msrb.mxu2 %v897_v28 }
 0x8be   :  { %v1035_v29 = vpop.permute.xlu0 %1034  ;;  %v937_v30 = vpop.permute.xlu1 %936 }
 0x8bf   :  { %v1040_v31 = vsel %vm186_vm8, %v1035_v29, 0  ;;  %v942_v50 = vsel %vm264_vm9, %v937_v30, 0  ;;  %1646 = vmatmul.msk.bf16.vlgmr.msrb.gmra.mxu2 %vm186_vm8, %v858_v22  ;;  %v1723_v30 = vld [vmem:[%s2316_s6 + $0x18] sm:$0xff] }
 0x8c0   :  { %951 = vmatpush.bf16.msra.mxu3 %v942_v50  ;;  %1049 = vmatpush.bf16.xpose.msra.mxu2 %v1040_v31 }
 0x8c1   :  { %1168 = vmatpush.bf16.msrb.mxu1 %v1723_v30 }
 0x8c6   :  { %v958_v32 = vpop.permute.xlu1 %957 }
 0x8c7   :  { %v963_v33 = vsel %vm264_vm9, %v958_v32, 0 }
 0x8c8   :  { %972 = vmatpush.bf16.msra.mxu0 %v963_v33  ;;  %1191 = vmatpush.bf16.msrb.mxu2 %v1722_v9 }
 0x8cf   :  { %1650 = vmatmul.msk.bf16.vlgmr.msra.gmra.mxu2 %vm186_vm8, %v1033_v8 }
 0x91c   :  { %v884_v34 = vpop.f32.mrf.mxu1 }
 0x91d   :  { %v912_v61 = vmul.f32 0.25, %v884_v34 }
 0x91f   :  { %v914_v35 = vadd.f32 %v912_v61, %v2010_v17 }
 0x921   :  { %v916_v36 = vsel %vm238_vm10, %v914_v35, -inf }
 0x922   :  { %917 = vmax.xlane.f32.xlu0 %v916_v36 }
 0x924   :  { %v886_v37 = vpop.f32.mrf.mxu1 }
 0x934   :  { %v1028_v62 = vpop.f32.mrf.mxu1 }
 0x935   :  { %v1055_v38 = vmul.f32 0.25, %v1028_v62 }
 0x936   :  { %1079 = vrot.lane.b32.xlu0 %v866_v19, %s1833_s1 }
 0x937   :  { %v1057_v39 = vadd.f32 %v1055_v38, %v2010_v17 }
 0x939   :  { %v1059_v40 = vsel %vm238_vm10, %v1057_v39, -inf }
 0x93a   :  { %1060 = vmax.xlane.f32.xlu1 %v1059_v40 }
 0x93c   :  { %v1030_v41 = vpop.f32.mrf.mxu1 }
 0x942   :  { %v908_v42 = vpop.f32.mrf.mxu2 }
 0x943   :  { %v913_v43 = vmul.f32 0.25, %v908_v42 }
 0x945   :  { %v915_v44 = vadd.f32 %v913_v43, %v2014_v24 }
 0x947   :  { %v919_v45 = vsel %vm238_vm10, %v915_v44, -inf }
 0x948   :  { %920 = vmax.xlane.f32.xlu2 %v919_v45 }
 0x94a   :  { %v910_v46 = vpop.f32.mrf.mxu2 }
 0x952   :  { %v1051_v47 = vpop.f32.mrf.mxu2 }
 0x953   :  { %v1056_v48 = vmul.f32 0.25, %v1051_v47 }
 0x955   :  { %v1058_v51 = vadd.f32 %v1056_v48, %v2014_v24 }
 0x957   :  { %v1062_v52 = vsel %vm238_vm10, %v1058_v51, -inf }
 0x958   :  { %1063 = vmax.xlane.f32.xlu2 %v1062_v52 }
 0x95a   :  { %v1053_v17 = vpop.f32.mrf.mxu2 }
 0x970   :  { %1100 = vrot.lane.b32.xlu2 %v890_v25, %s1833_s1 }
 0x995   :  { %v918_v53 = vpop.xlane.xlu0 %917 }
 0x996   :  { %v922_v54 = vsub.f32 %v914_v35, %v918_v53 }
 0x998   :  { %v924_v55 = vmul.f32 1.442695, %v922_v54 }
 0x99a   :  { %1794 = vpow2.f32 %v924_v55 }
 0x9a0   :  { %v1795_v56 = vpop.eup %1794 }
 0x9a1   :  { %v934_v57 = vpack.c.bf16 %v1795_v56, %v1795_v56  ;;  %v928_v58 = vsel %vm238_vm10, %v1795_v56, 0.0 }
 0x9a2   :  { %929 = vadd.xlane.f32.xlu0 %v928_v58 }
 0x9a3   :  { %1647 = vmatmul.msk.bf16.vlgmr.msra.gmra.mxu3 %vm238_vm10, %v934_v57 }
 0x9a8   :  { %v1080_v59 = vpop.permute.xlu0 %1079 }
 0x9a9   :  { %v1085_v24 = vsel %vm264_vm9, %v1080_v59, 0 }
 0x9aa   :  { %1094 = vmatpush.bf16.msrb.mxu3 %v1085_v24 }
 0x9ad   :  { %v1061_v60 = vpop.xlane.xlu1 %1060 }
 0x9ae   :  { %v1065_v63 = vsub.f32 %v1057_v39, %v1061_v60 }
 0x9b0   :  { %v1067_v0 = vmul.f32 1.442695, %v1065_v63 }
 0x9b2   :  { %1796 = vpow2.f32 %v1067_v0 }
 0x9b8   :  { %v1797_v1 = vpop.eup %1796 }
 0x9b9   :  { %v1077_v4 = vpack.c.bf16 %v1797_v1, %v1797_v1  ;;  %v1071_v20 = vsel %vm238_vm10, %v1797_v1, 0.0 }
 0x9bb   :  { %1651 = vmatmul.msk.bf16.vlgmr.msrb.gmra.mxu3 %vm238_vm10, %v1077_v4  ;;  %v921_v5 = vpop.xlane.xlu2 %920 }
 0x9bc   :  { %v923_v6 = vsub.f32 %v915_v44, %v921_v5 }
 0x9be   :  { %v926_v13 = vmul.f32 1.442695, %v923_v6 }
 0x9c0   :  { %1798 = vpow2.f32 %v926_v13 }
 0x9c6   :  { %v1799_v11 = vpop.eup %1798 }
 0x9c7   :  { %v935_v14 = vpack.c.bf16 %v1799_v11, %v1799_v11  ;;  %v931_v15 = vsel %vm238_vm10, %v1799_v11, 0.0 }
 0x9c8   :  { %932 = vadd.xlane.f32.xlu1 %v931_v15 }
 0x9c9   :  { %1648 = vmatmul.msk.bf16.vlgmr.msra.gmra.mxu0 %vm238_vm10, %v935_v14 }
 0x9cb   :  { %v1064_v16 = vpop.xlane.xlu2 %1063 }
 0x9cc   :  { %v1066_v18 = vsub.f32 %v1058_v51, %v1064_v16 }
 0x9ce   :  { %v1069_v19 = vmul.f32 1.442695, %v1066_v18 }
 0x9d0   :  { %1800 = vpow2.f32 %v1069_v19  ;;  %1072 = vadd.xlane.f32.xlu1 %v1071_v20 }
 0x9d3   :  { %v1101_v21 = vpop.permute.xlu2 %1100 }
 0x9d4   :  { %v1106_v22 = vsel %vm264_vm9, %v1101_v21, 0 }
 0x9d5   :  { %1115 = vmatpush.bf16.msrb.mxu0 %v1106_v22 }
 0x9d6   :  { %v1801_v23 = vpop.eup %1800 }
 0x9d7   :  { %v1078_v25 = vpack.c.bf16 %v1801_v23, %v1801_v23  ;;  %v1074_v3 = vsel %vm238_vm10, %v1801_v23, 0.0 }
 0x9d8   :  { %1075 = vadd.xlane.f32.xlu2 %v1074_v3 }
 0x9d9   :  { %1652 = vmatmul.msk.bf16.vlgmr.msrb.gmra.mxu0 %vm238_vm10, %v1078_v25 }
 0xa15   :  { %v930_v27 = vpop.xlane.xlu0 %929 }
 0xa16   :  { %1802 = vrcp.f32 %v930_v27  ;;  %v989_v35 = vand.u32 2147483648, %v930_v27  ;;  %vm983_vm10 = vweird.f32 %v930_v27  ;;  %v987_v36 = vand.u32 2147483647, %v930_v27 }
 0xa18   :  { %v990_v43 = vor.u32 1.1754944e-38, %v989_v35  ;;  %vm988_vm1 = vcmp.eq.f32.partialorder %v987_v36, 8.507059e+37 }
 0xa1c   :  { %v1803_v2 = vpop.eup %1802 }
 0xa1d   :  { %v979_v8 = vmul.f32 %v1803_v2, %v930_v27  ;;  %vm984_vm9 = vweird.f32 %v1803_v2 }
 0xa1e   :  { %vm985_vm14 = vmor %vm983_vm10, %vm984_vm9 }
 0xa1f   :  { %v980_v28 = vsub.f32 1.0, %v979_v8 }
 0xa21   :  { %v981_v50 = vmul.f32 %v1803_v2, %v980_v28 }
 0xa23   :  { %v982_v33 = vadd.f32 %v1803_v2, %v981_v50 }
 0xa25   :  { %v986_v40 = vsel %vm985_vm14, %v1803_v2, %v982_v33 }
 0xa26   :  { %v953_v26 = vpop.f32.mrf.mxu3  ;;  %v991_v46 = vsel %vm988_vm1, %v990_v43, %v986_v40  ;;  %v1724_v43 = vld [vmem:[%s2321_s10 + $0x10] sm:$0xff] }
 0xa27   :  { %v992_v53 = vmul.f32 %v991_v46, %v953_v26  ;;  %v1747_v26 = vld [vmem:[%s2317_s7 + $0x1] ss:$0 sm:$0xff] }
 0xa2e   :  { %v955_v49 = vpop.f32.mrf.mxu3 }
 0xa3b   :  { %v933_v29 = vpop.xlane.xlu1 %932 }
 0xa3c   :  { %1804 = vrcp.f32 %v933_v29  ;;  %v1004_v38 = vand.u32 2147483648, %v933_v29  ;;  %v1002_v42 = vand.u32 2147483647, %v933_v29  ;;  %vm998_vm2 = vweird.f32 %v933_v29 }
 0xa3e   :  { %v2187_v31 = vpop.f32.mrf.mxu3  ;;  %v1005_v47 = vor.u32 1.1754944e-38, %v1004_v38  ;;  %vm1003_vm5 = vcmp.eq.f32.partialorder %v1002_v42, 8.507059e+37 }
 0xa42   :  { %v1805_v32 = vpop.eup %1804 }
 0xa43   :  { %v994_v34 = vmul.f32 %v1805_v32, %v933_v29  ;;  %v1073_v61 = vpop.xlane.xlu1 %1072  ;;  %vm999_vm15 = vweird.f32 %v1805_v32 }
 0xa44   :  { %1806 = vrcp.f32 %v1073_v61  ;;  %vm1000_vm3 = vmor %vm998_vm2, %vm999_vm15  ;;  %v1132_v63 = vand.u32 2147483648, %v1073_v61  ;;  %vm1126_vm7 = vweird.f32 %v1073_v61  ;;  %v1130_v1 = vand.u32 2147483647, %v1073_v61 }
 0xa45   :  { %v995_v37 = vsub.f32 1.0, %v994_v34 }
 0xa46   :  { %v974_v62 = vpop.f32.mrf.mxu0  ;;  %v1098_v39 = vpop.f32.mrf.mxu3  ;;  %v1133_v14 = vor.u32 1.1754944e-38, %v1132_v63  ;;  %vm1131_vm13 = vcmp.eq.f32.partialorder %v1130_v1, 8.507059e+37  ;;  %v1749_v1 = vld [vmem:[%s2319_s9 + $0x1] ss:$0 sm:$0xff] }
 0xa47   :  { %v996_v41 = vmul.f32 %v1805_v32, %v995_v37 }
 0xa49   :  { %v997_v44 = vadd.f32 %v1805_v32, %v996_v41 }
 0xa4a   :  { %v1807_v45 = vpop.eup %1806 }
 0xa4b   :  { %v1122_v48 = vmul.f32 %v1807_v45, %v1073_v61  ;;  %v1001_v51 = vsel %vm1000_vm3, %v1805_v32, %v997_v44  ;;  %v1076_v52 = vpop.xlane.xlu2 %1075  ;;  %vm1127_vm6 = vweird.f32 %v1807_v45 }
 0xa4c   :  { %v1006_v17 = vsel %vm1003_vm5, %v1005_v47, %v1001_v51  ;;  %1808 = vrcp.f32 %v1076_v52  ;;  %vm1128_vm11 = vmor %vm1126_vm7, %vm1127_vm6  ;;  %v1147_v5 = vand.u32 2147483648, %v1076_v52  ;;  %v1145_v11 = vand.u32 2147483647, %v1076_v52 }
 0xa4d   :  { %v1123_v54 = vsub.f32 1.0, %v1122_v48  ;;  %v1007_v55 = vmul.f32 %v1006_v17, %v974_v62  ;;  %vm1141_vm9 = vweird.f32 %v1076_v52 }
 0xa4e   :  { %v976_v56 = vpop.f32.mrf.mxu0  ;;  %v1148_v18 = vor.u32 1.1754944e-38, %v1147_v5  ;;  %vm1146_vm14 = vcmp.eq.f32.partialorder %v1145_v11, 8.507059e+37 }
 0xa4f   :  { %v1124_v57 = vmul.f32 %v1807_v45, %v1123_v54  ;;  %v1008_v58 = vpack.c.bf16 %v1007_v55, %v992_v53 }
 0xa51   :  { %1662 = vmatmul.msk.bf16.vlgmr.msrb.gmra.mxu2 %vm186_vm8, %v1008_v58  ;;  %v1125_v60 = vadd.f32 %v1807_v45, %v1124_v57 }
 0xa52   :  { %v1809_v59 = vpop.eup %1808 }
 0xa53   :  { %v1137_v24 = vmul.f32 %v1809_v59, %v1076_v52  ;;  %v1129_v6 = vsel %vm1128_vm11, %v1807_v45, %v1125_v60  ;;  %vm1142_vm12 = vweird.f32 %v1809_v59 }
 0xa54   :  { %v1134_v16 = vsel %vm1131_vm13, %v1133_v14, %v1129_v6  ;;  %vm1143_vm10 = vmor %vm1141_vm9, %vm1142_vm12 }
 0xa55   :  { %v1138_v0 = vsub.f32 1.0, %v1137_v24  ;;  %v1135_v21 = vmul.f32 %v1134_v16, %v2187_v31  ;;  %v1748_v24 = vld [vmem:[%s2318_s8 + $0x1] ss:$0 sm:$0xff] }
 0xa56   :  { %v1117_v4 = vpop.f32.mrf.mxu0 }
 0xa57   :  { %v1139_v13 = vmul.f32 %v1809_v59, %v1138_v0 }
 0xa59   :  { %v1140_v15 = vadd.f32 %v1809_v59, %v1139_v13 }
 0xa5b   :  { %v1144_v19 = vsel %vm1143_vm10, %v1809_v59, %v1140_v15  ;;  %v1750_v15 = vld [vmem:[%s2320_s11 + $0x1] ss:$0 sm:$0xff] }
 0xa5c   :  { %v1149_v20 = vsel %vm1146_vm14, %v1148_v18, %v1144_v19 }
 0xa5d   :  { %v1150_v22 = vmul.f32 %v1149_v20, %v1117_v4 }
 0xa5e   :  { %v1119_v23 = vpop.f32.mrf.mxu0 }
 0xa5f   :  { %v1151_v25 = vpack.c.bf16 %v1150_v22, %v1135_v21 }
 0xa61   :  { %1657 = vmatmul.msk.bf16.vlgmr.msrb.gmra.mxu1 %vm186_vm8, %v1151_v25 }
 0xad4   :  { %v1193_v3 = vpop.f32.mrf.mxu2 }
 0xadc   :  { %v1195_v28 = vpop.f32.mrf.mxu2 }
 0xade   :  { %v1170_v27 = vpop.f32.mrf.mxu1 }
 0xadf   :  { %v1194_v9 = vadd.f32 %v1193_v3, %v1170_v27 }
 0xae1   :  { %v1203_v49 = vadd.f32 %v1747_v26, %v1194_v9 }
 0xae3   :  { %v1205_v2 = vadd.f32 %v1203_v49, %v2133_v7 }
 0xae5   :  { %v1211_v8 = vsel %vm70_vm0, %v1205_v2, 0.0 }
 0xae6   :  { %1212 = vadd.xlane.f32.xlu1 %v1211_v8  ;;  %v1172_v29 = vpop.f32.mrf.mxu1 }
 0xae7   :  { %v1196_v30 = vadd.f32 %v1195_v28, %v1172_v29  ;;  %v1729_v28 = vld [vmem:[%s2323_s12 + $0x38] sm:$0xff] }
 0xae8   :  { %1431 = vmatpush.bf16.msra.mxu0 %v1729_v28 }
 0xae9   :  { %v1204_v31 = vadd.f32 %v1747_v26, %v1196_v30 }
 0xaeb   :  { %v1206_v50 = vadd.f32 %v1204_v31, %v2135_v12  ;;  %v1725_v12 = vld [vmem:[%s2321_s10 + $0x18] sm:$0xff] }
 0xaec   :  { %1297 = vmatpush.bf16.msra.mxu3 %v1725_v12 }
 0xaed   :  { %v1214_v32 = vsel %vm70_vm0, %v1206_v50, 0.0 }
 0xaee   :  { %1215 = vadd.xlane.f32.xlu1 %v1214_v32  ;;  %v1728_v32 = vld [vmem:[%s2323_s12 + $0x30] sm:$0xff] }
 0xaef   :  { %1432 = vmatpush.bf16.msra.mxu0 %v1728_v32 }
 0xaf0   :  { %1298 = vmatpush.bf16.msra.mxu3 %v1724_v43 }
 0xb59   :  { %v1213_v33 = vpop.xlane.xlu1 %1212 }
 0xb5a   :  { %v1217_v34 = vmul.f32 %v1213_v33, %v1947_v10 }
 0xb5c   :  { %v1219_v61 = vsub.f32 %v1205_v2, %v1217_v34 }
 0xb5e   :  { %v1221_v35 = vmul.f32 %v1219_v61, %v1219_v61 }
 0xb60   :  { %v1223_v36 = vsel %vm70_vm0, %v1221_v35, 0.0 }
 0xb61   :  { %1224 = vadd.xlane.f32.xlu1 %v1223_v36  ;;  %v1216_v7 = vpop.xlane.xlu1 %1215 }
 0xb62   :  { %v1218_v37 = vmul.f32 %v1216_v7, %v1947_v10 }
 0xb64   :  { %v1220_v62 = vsub.f32 %v1206_v50, %v1218_v37 }
 0xb66   :  { %v1222_v38 = vmul.f32 %v1220_v62, %v1220_v62 }
 0xb68   :  { %v1226_v39 = vsel %vm70_vm0, %v1222_v38, 0.0 }
 0xb69   :  { %1227 = vadd.xlane.f32.xlu1 %v1226_v39 }
 0xbd4   :  { %v1225_v40 = vpop.xlane.xlu1 %1224 }
 0xbd5   :  { %v1229_v41 = vmul.f32 %v1225_v40, %v1947_v10 }
 0xbd7   :  { %v1231_v42 = vadd.f32 1e-12, %v1229_v41 }
 0xbd9   :  { %1810 = vrsqrt.f32 %v1231_v42  ;;  %vm1239_vm15 = vweird.f32 %v1231_v42 }
 0xbdc   :  { %v1228_v44 = vpop.xlane.xlu1 %1227 }
 0xbdd   :  { %v1230_v45 = vmul.f32 %v1228_v44, %v1947_v10  ;;  %v1726_v44 = vld [vmem:[%s2323_s12 + $0x20] sm:$0xff] }
 0xbdf   :  { %v1811_v46 = vpop.eup %1810  ;;  %v1232_v47 = vadd.f32 1e-12, %v1230_v45 }
 0xbe0   :  { %v1234_v48 = vmul.f32 %v1811_v46, %v1231_v42  ;;  %vm1240_vm8 = vweird.f32 %v1811_v46 }
 0xbe1   :  { %1812 = vrsqrt.f32 %v1232_v47  ;;  %vm1241_vm1 = vmor %vm1239_vm15, %vm1240_vm8  ;;  %vm1249_vm3 = vweird.f32 %v1232_v47 }
 0xbe2   :  { %v1235_v51 = vmul.f32 %v1811_v46, %v1234_v48 }
 0xbe4   :  { %v1236_v52 = vmul.f32 0.5, %v1235_v51 }
 0xbe6   :  { %v1237_v17 = vsub.f32 1.5, %v1236_v52 }
 0xbe7   :  { %v1813_v53 = vpop.eup %1812 }
 0xbe8   :  { %v1238_v54 = vmul.f32 %v1811_v46, %v1237_v17  ;;  %v1244_v55 = vmul.f32 %v1813_v53, %v1232_v47  ;;  %vm1250_vm2 = vweird.f32 %v1813_v53 }
 0xbe9   :  { %vm1251_vm5 = vmor %vm1249_vm3, %vm1250_vm2 }
 0xbea   :  { %v1245_v56 = vmul.f32 %v1813_v53, %v1244_v55  ;;  %v1242_v57 = vsel %vm1241_vm1, %v1811_v46, %v1238_v54 }
 0xbeb   :  { %v1253_v60 = vmul.f32 %v1242_v57, %v1219_v61 }
 0xbec   :  { %v1246_v58 = vmul.f32 0.5, %v1245_v56 }
 0xbed   :  { %v1258_v4 = vmul.f32 %v1748_v24, %v1253_v60 }
 0xbee   :  { %v1247_v59 = vsub.f32 1.5, %v1246_v58 }
 0xbef   :  { %v2217_v13 = vadd.f32 %v1749_v1, %v1258_v4 }
 0xbf0   :  { %v1248_v63 = vmul.f32 %v1813_v53, %v1247_v59 }
 0xbf2   :  { %v1252_v0 = vsel %vm1251_vm5, %v1813_v53, %v1248_v63 }
 0xbf3   :  { %v1254_v5 = vmul.f32 %v1252_v0, %v1220_v62  ;;  %v1727_v62 = vld [vmem:[%s2323_s12 + $0x28] sm:$0xff] }
 0xbf4   :  { %1433 = vmatpush.bf16.msra.mxu0 %v1727_v62 }
 0xbf5   :  { %v1259_v6 = vmul.f32 %v1748_v24, %v1254_v5 }
 0xbf7   :  { %v2219_v11 = vadd.f32 %v1749_v1, %v1259_v6 }
 0xbf8   :  { %1434 = vmatpush.bf16.msra.mxu0 %v1726_v44  ;;  %v1503_v44 = vld [vmem:[%s2327_s16 + $0x10] sm:$0xff] }
 0xbf9   :  { %v1270_v14 = vpack.c.bf16 %v2219_v11, %v2217_v13 }
 0xbfb   :  { %1679 = vmatmul.msk.bf16.vlgmr.msra.gmra.mxu3 %vm70_vm0, %v1270_v14 }
 0xc7e   :  { %v1300_v16 = vpop.f32.mrf.mxu3 }
 0xc7f   :  { %v2227_v18 = vadd.f32 %v1750_v15, %v1300_v16 }
 0xc81   :  { %v2230_v19 = vmul.f32 0.70710677, %v2227_v18 }
 0xc83   :  { %v1309_v20 = vand.u32 2147483647, %v2230_v19  ;;  %vm1375_vm8 = vcmp.ge.f32.partialorder %v2230_v19, 0.0  ;;  %v1751_v19 = vld [vmem:[%s2322_s13 + $0x1] ss:$0 sm:$0xff] }
 0xc85   :  { %v1311_v21 = vmul.f32 0.3275911, %v1309_v20  ;;  %v1363_v36 = vsub.f32 0.0, %v1309_v20 }
 0xc86   :  { %v1302_v22 = vpop.f32.mrf.mxu3 }
 0xc87   :  { %v1313_v23 = vadd.f32 1.0, %v1311_v21  ;;  %v2233_v25 = vadd.f32 %v1750_v15, %v1302_v22  ;;  %v1365_v40 = vmul.f32 %v1363_v36, %v1309_v20 }
 0xc89   :  { %1814 = vrcp.f32 %v1313_v23  ;;  %v2236_v3 = vmul.f32 0.70710677, %v2233_v25  ;;  %v1326_v29 = vand.u32 2147483648, %v1313_v23  ;;  %v1324_v31 = vand.u32 2147483647, %v1313_v23 }
 0xc8a   :  { %vm1320_vm7 = vweird.f32 %v1313_v23  ;;  %v1367_v48 = vmul.f32 1.442695, %v1365_v40  ;;  %v1306_v28 = vmul.f32 0.5, %v2233_v25 }
 0xc8b   :  { %v1310_v26 = vand.u32 2147483647, %v2236_v3  ;;  %v1327_v33 = vor.u32 1.1754944e-38, %v1326_v29  ;;  %vm1325_vm12 = vcmp.eq.f32.partialorder %v1324_v31, 8.507059e+37  ;;  %vm1376_vm15 = vcmp.ge.f32.partialorder %v2236_v3, 0.0 }
 0xc8d   :  { %v1312_v27 = vmul.f32 0.3275911, %v1310_v26  ;;  %v1364_v53 = vsub.f32 0.0, %v1310_v26 }
 0xc8f   :  { %v1815_v9 = vpop.eup %1814  ;;  %v1314_v2 = vadd.f32 1.0, %v1312_v27  ;;  %v1366_v58 = vmul.f32 %v1364_v53, %v1310_v26 }
 0xc90   :  { %v1316_v49 = vmul.f32 %v1815_v9, %v1313_v23  ;;  %vm1321_vm6 = vweird.f32 %v1815_v9 }
 0xc91   :  { %1816 = vrcp.f32 %v1314_v2  ;;  %vm1322_vm11 = vmor %vm1320_vm7, %vm1321_vm6  ;;  %v1341_v12 = vand.u32 2147483648, %v1314_v2  ;;  %v1339_v42 = vand.u32 2147483647, %v1314_v2  ;;  %vm1335_vm9 = vweird.f32 %v1314_v2 }
 0xc92   :  { %v1317_v8 = vsub.f32 1.0, %v1316_v49  ;;  %1818 = vpow2.f32 %v1367_v48  ;;  %v1369_v0 = vmul.f32 1.442695, %v1366_v58  ;;  %vm1512_vm7 = vcmask 1041409  }
 0xc93   :  { %v1342_v47 = vor.u32 1.1754944e-38, %v1341_v12  ;;  %vm1340_vm14 = vcmp.eq.f32.partialorder %v1339_v42, 8.507059e+37 }
 0xc94   :  { %v1318_v30 = vmul.f32 %v1815_v9, %v1317_v8  ;;  %1820 = vpow2.f32 %v1369_v0  ;;  %v1305_v8 = vmul.f32 0.5, %v2227_v18 }
 0xc96   :  { %v1319_v50 = vadd.f32 %v1815_v9, %v1318_v30 }
 0xc97   :  { %v1817_v34 = vpop.eup %1816 }
 0xc98   :  { %v1323_v61 = vsel %vm1322_vm11, %v1815_v9, %v1319_v50  ;;  %v1331_v7 = vmul.f32 %v1817_v34, %v1314_v2  ;;  %vm1336_vm13 = vweird.f32 %v1817_v34  ;;  %v1819_v1 = vpop.eup %1818  ;;  %vm1568_vm11 = vcmask 17408  }
 0xc99   :  { %v1328_v35 = vsel %vm1325_vm12, %v1327_v33, %v1323_v61  ;;  %vm1337_vm10 = vmor %vm1335_vm9, %vm1336_vm13 }
 0xc9a   :  { %v1345_v37 = vmul.f32 1.0614054, %v1328_v35  ;;  %v1332_v38 = vsub.f32 1.0, %v1331_v7  ;;  %v1821_v22 = vpop.eup %1820 }
 0xc9c   :  { %v1347_v39 = vadd.f32 -1.4531521, %v1345_v37  ;;  %v1333_v41 = vmul.f32 %v1817_v34, %v1332_v38 }
 0xc9e   :  { %v1349_v43 = vmul.f32 %v1347_v39, %v1328_v35  ;;  %v1334_v45 = vadd.f32 %v1817_v34, %v1333_v41 }
 0xca0   :  { %v1351_v46 = vadd.f32 1.4214138, %v1349_v43  ;;  %v1338_v51 = vsel %vm1337_vm10, %v1817_v34, %v1334_v45  ;;  %v1504_v43 = vld [vmem:[%s2327_s16 + $0x18] sm:$0xff] }
 0xca1   :  { %v1343_v17 = vsel %vm1340_vm14, %v1342_v47, %v1338_v51  ;;  %1528 = vmatpush.msra.mxu1 %v1504_v43  ;;  %v1501_v47 = vld [vmem:[%s2327_s16] sm:$0xff] }
 0xca2   :  { %v1353_v52 = vmul.f32 %v1351_v46, %v1328_v35  ;;  %v1346_v54 = vmul.f32 1.0614054, %v1343_v17  ;;  %v1502_v46 = vld [vmem:[%s2327_s16 + $0x8] sm:$0xff] }
 0xca3   :  { %1529 = vmatpush.msra.mxu1 %v1503_v44 }
 0xca4   :  { %v1355_v55 = vadd.f32 -0.28449672, %v1353_v52  ;;  %v1348_v56 = vadd.f32 -1.4531521, %v1346_v54 }
 0xca5   :  { %1530 = vmatpush.msra.mxu1 %v1502_v46 }
 0xca6   :  { %v1357_v57 = vmul.f32 %v1355_v55, %v1328_v35  ;;  %v1350_v59 = vmul.f32 %v1348_v56, %v1343_v17 }
 0xca7   :  { %1531 = vmatpush.msra.mxu1 %v1501_v47 }
 0xca8   :  { %v1359_v24 = vadd.f32 0.2548296, %v1357_v57  ;;  %v1352_v60 = vadd.f32 1.4214138, %v1350_v59 }
 0xcaa   :  { %v1361_v63 = vmul.f32 %v1359_v24, %v1328_v35  ;;  %v1354_v4 = vmul.f32 %v1352_v60, %v1343_v17 }
 0xcac   :  { %v1371_v5 = vmul.f32 %v1819_v1, %v1361_v63  ;;  %v1356_v6 = vadd.f32 -0.28449672, %v1354_v4 }
 0xcae   :  { %v1373_v14 = vsub.f32 1.0, %v1371_v5  ;;  %v1358_v15 = vmul.f32 %v1356_v6, %v1343_v17 }
 0xcb0   :  { %v1360_v16 = vadd.f32 0.2548296, %v1358_v15  ;;  %v1377_v20 = vsub.f32 0.0, %v1373_v14 }
 0xcb2   :  { %v1362_v21 = vmul.f32 %v1360_v16, %v1343_v17  ;;  %v1379_v26 = vsel %vm1375_vm8, %v1373_v14, %v1377_v20  ;;  %v1753_v16 = vld [vmem:[%s2325_s15 + $0x1] ss:$0 sm:$0xff] }
 0xcb3   :  { %v1381_v49 = vadd.f32 1.0, %v1379_v26  ;;  %v1540_v26 = vld [vmem:[%s2329_s18 + $0x18] sm:$0xff] }
 0xcb4   :  { %v1372_v23 = vmul.f32 %v1821_v22, %v1362_v21  ;;  %1560 = vmatpush.msra.mxu2 %v1540_v26 }
 0xcb5   :  { %v1383_v30 = vmul.f32 %v1381_v49, %v1305_v8  ;;  %v1537_v49 = vld [vmem:[%s2329_s18] sm:$0xff] }
 0xcb6   :  { %v1374_v27 = vsub.f32 1.0, %v1372_v23 }
 0xcb8   :  { %v1378_v9 = vsub.f32 0.0, %v1374_v27 }
 0xcba   :  { %v1380_v2 = vsel %vm1376_vm15, %v1374_v27, %v1378_v9  ;;  %v1539_v27 = vld [vmem:[%s2329_s18 + $0x10] sm:$0xff]  ;;  %v1538_v9 = vld [vmem:[%s2329_s18 + $0x8] sm:$0xff] }
 0xcbb   :  { %v1382_v29 = vadd.f32 1.0, %v1380_v2  ;;  %1561 = vmatpush.msra.mxu2 %v1539_v27  ;;  %v1754_v2 = vld [vmem:[%s2326_s17] ss:$0 sm:$0xff] }
 0xcbd   :  { %v1384_v31 = vmul.f32 %v1382_v29, %v1306_v28  ;;  %1562 = vmatpush.msra.mxu2 %v1538_v9 }
 0xcbf   :  { %v1394_v50 = vpack.c.bf16 %v1384_v31, %v1383_v30  ;;  %1563 = vmatpush.msra.mxu2 %v1537_v49  ;;  %v1755_v30 = vld [vmem:[%s2328_s19] ss:$0 sm:$0xff] }
 0xcc1   :  { %1705 = vmatmul.msk.bf16.vlgmr.msra.gmra.mxu0 %vm741_vm4, %v1394_v50 }
 0xd3e   :  { %v1436_v32 = vpop.f32.mrf.mxu0 }
 0xd3f   :  { %v1437_v33 = vadd.f32 %v1751_v19, %v1436_v32 }
 0xd41   :  { %v1441_v34 = vadd.f32 %v1437_v33, %v2217_v13 }
 0xd43   :  { %v1447_v3 = vsel %vm70_vm0, %v1441_v34, 0.0 }
 0xd44   :  { %1448 = vadd.xlane.f32.xlu1 %v1447_v3 }
 0xd46   :  { %v1438_v18 = vpop.f32.mrf.mxu0 }
 0xd47   :  { %v1439_v61 = vadd.f32 %v1751_v19, %v1438_v18 }
 0xd49   :  { %v1442_v25 = vadd.f32 %v1439_v61, %v2219_v11 }
 0xd4b   :  { %v1450_v35 = vsel %vm70_vm0, %v1442_v25, 0.0 }
 0xd4c   :  { %1451 = vadd.xlane.f32.xlu0 %v1450_v35 }
 0xdb7   :  { %v1449_v36 = vpop.xlane.xlu1 %1448 }
 0xdb8   :  { %v1453_v7 = vmul.f32 %v1449_v36, %v1947_v10 }
 0xdba   :  { %v1455_v37 = vsub.f32 %v1441_v34, %v1453_v7 }
 0xdbc   :  { %v1457_v62 = vmul.f32 %v1455_v37, %v1455_v37 }
 0xdbe   :  { %v1459_v38 = vsel %vm70_vm0, %v1457_v62, 0.0 }
 0xdbf   :  { %v1452_v39 = vpop.xlane.xlu0 %1451  ;;  %1460 = vadd.xlane.f32.xlu2 %v1459_v38 }
 0xdc0   :  { %v1454_v13 = vmul.f32 %v1452_v39, %v1947_v10 }
 0xdc2   :  { %v1456_v12 = vsub.f32 %v1442_v25, %v1454_v13 }
 0xdc4   :  { %v1458_v40 = vmul.f32 %v1456_v12, %v1456_v12 }
 0xdc6   :  { %v1462_v41 = vsel %vm70_vm0, %v1458_v40, 0.0 }
 0xdc7   :  { %1463 = vadd.xlane.f32.xlu0 %v1462_v41 }
 0xe32   :  { %v1461_v11 = vpop.xlane.xlu2 %1460 }
 0xe33   :  { %v1465_v42 = vmul.f32 %v1461_v11, %v1947_v10 }
 0xe35   :  { %v1467_v45 = vadd.f32 1e-12, %v1465_v42 }
 0xe37   :  { %1822 = vrsqrt.f32 %v1467_v45  ;;  %vm1475_vm1 = vweird.f32 %v1467_v45 }
 0xe3a   :  { %v1464_v48 = vpop.xlane.xlu0 %1463 }
 0xe3b   :  { %v1466_v51 = vmul.f32 %v1464_v48, %v1947_v10  ;;  %v1752_v10 = vld [vmem:[%s2324_s14 + $0x1] ss:$0 sm:$0xff] }
 0xe3d   :  { %v1823_v52 = vpop.eup %1822  ;;  %v1468_v17 = vadd.f32 1e-12, %v1466_v51 }
 0xe3e   :  { %v1470_v53 = vmul.f32 %v1823_v52, %v1467_v45  ;;  %vm1476_vm4 = vweird.f32 %v1823_v52 }
 0xe3f   :  { %1824 = vrsqrt.f32 %v1468_v17  ;;  %vm1477_vm2 = vmor %vm1475_vm1, %vm1476_vm4  ;;  %vm1485_vm5 = vweird.f32 %v1468_v17 }
 0xe40   :  { %v1471_v54 = vmul.f32 %v1823_v52, %v1470_v53 }
 0xe42   :  { %v1472_v55 = vmul.f32 0.5, %v1471_v54 }
 0xe44   :  { %v1473_v56 = vsub.f32 1.5, %v1472_v55 }
 0xe45   :  { %v1825_v57 = vpop.eup %1824 }
 0xe46   :  { %v1480_v58 = vmul.f32 %v1825_v57, %v1468_v17  ;;  %v1474_v59 = vmul.f32 %v1823_v52, %v1473_v56  ;;  %vm1486_vm3 = vweird.f32 %v1825_v57 }
 0xe47   :  { %vm1487_vm6 = vmor %vm1485_vm5, %vm1486_vm3 }
 0xe48   :  { %v1481_v24 = vmul.f32 %v1825_v57, %v1480_v58  ;;  %v1478_v63 = vsel %vm1477_vm2, %v1823_v52, %v1474_v59 }
 0xe49   :  { %v1489_v4 = vmul.f32 %v1478_v63, %v1455_v37 }
 0xe4a   :  { %v1482_v60 = vmul.f32 0.5, %v1481_v24 }
 0xe4b   :  { %v1494_v14 = vmul.f32 %v1752_v10, %v1489_v4 }
 0xe4c   :  { %v1483_v0 = vsub.f32 1.5, %v1482_v60 }
 0xe4d   :  { %v1499_v21 = vadd.f32 %v1753_v16, %v1494_v14 }
 0xe4e   :  { %v1484_v1 = vmul.f32 %v1825_v57, %v1483_v0 }
 0xe50   :  { %v1488_v5 = vsel %vm1487_vm6, %v1825_v57, %v1484_v1 }
 0xe51   :  { %v1490_v6 = vmul.f32 %v1488_v5, %v1456_v12 }
 0xe53   :  { %v1495_v15 = vmul.f32 %v1752_v10, %v1490_v6 }
 0xe55   :  { %v1500_v20 = vadd.f32 %v1753_v16, %v1495_v15 }
 0xe57   :  { %v1511_v22 = vrot.slane %v1500_v20, 7 }
 0xe59   :  { %v1513_v23 = vsel %vm1512_vm7, %v1511_v22, %v1499_v21 }
 0xe5a   :  { %1708 = vmatmul.msk.f32.vlgmr.msra.gmra.mxu1 %vm70_vm0, %v1513_v23 }
 0xed7   :  { %v1533_v8 = vpop.f32.mrf.mxu1 }
 0xed8   :  { %v1534_v28 = vadd.f32 %v1754_v2, %v1533_v8 }
 0xeda   :  { %1826 = vtanh.f32 %v1534_v28 }
 0xee0   :  { %v1827_v29 = vpop.eup %1826 }
 0xee1   :  { %1709 = vmatmul.msk.f32.vlgmr.msra.gmra.mxu2 %vm70_vm0, %v1827_v29 }
 0xf64   :  { %v1565_v31 = vpop.f32.mrf.mxu2 }
 0xf65   :  { %v1566_v50 = vadd.f32 %v1755_v30, %v1565_v31 }
 0xf67   :  { %1569 = vst.msk [vmem:[%s2330_s20] sm:$0x3] %vm1568_vm11, %v1566_v50 }

</bundles_post_ra>
